<compile_context>
chip_gen: v7x
topology: tpu7x:2x2x1
jax: 0.10.0
libtpu: 0.0.40
codegen_flags: <defaults>
</compile_context>

<pallas_src>
import functools
import math

import jax
import jax.numpy as jnp
from jax import lax
from jax.experimental import pallas as pl
from jax.experimental.pallas import tpu as pltpu


_VMEM_LIMIT = 32 * 1024 * 1024  # safe scoped-VMEM budget on v5e/v6e/v7x


# ----------------------------- Pallas kernels -----------------------------

def _mha_math(xq, xkv, wqkv_ref, bqkv_ref, wo_ref, bo_ref, g_ref, b_ref, o_ref,
              *, nhead, scale, eps, causal, fused_qkv):
    """LayerNorm(xq + MHA(xq, xkv)) for one batch element; writes o_ref[0]."""
    T, D = xq.shape
    S = xkv.shape[0]
    dh = D // nhead

    w_all = wqkv_ref[...]          # (D, 3D), resident in VMEM
    b_all = bqkv_ref[...]          # (1, 3D)

    if fused_qkv:
        # self-attention: single (T,D)x(D,3D) matmul reads xq once.
        qkv = jnp.dot(xq, w_all, preferred_element_type=jnp.float32) + b_all
        q, k, v = qkv[:, :D], qkv[:, D:2 * D], qkv[:, 2 * D:]
    else:
        # cross-attention: Q from xq, fused KV from xkv ((D,2D) matmul).
        q = jnp.dot(xq, w_all[:, :D],
                    preferred_element_type=jnp.float32) + b_all[:, :D]
        kv = jnp.dot(xkv, w_all[:, D:],
                     preferred_element_type=jnp.float32) + b_all[:, D:]
        k, v = kv[:, :D], kv[:, D:]

    if causal:
        row = lax.broadcasted_iota(jnp.int32, (T, S), 0)
        col = lax.broadcasted_iota(jnp.int32, (T, S), 1)
        keep = row >= col

    acc = None
    for h in range(nhead):                      # static unrolled head loop
        sl = slice(h * dh, (h + 1) * dh)
        qh, kh, vh = q[:, sl], k[:, sl], v[:, sl]
        # QK^T via dot_general contracting dim 1 of both (no explicit k.T).
        s = lax.dot_general(qh, kh, (((1,), (1,)), ((), ())),
                            preferred_element_type=jnp.float32) * scale
        if causal:
            s = jnp.where(keep, s, jnp.float32(-1e30))
        m = jnp.max(s, axis=-1, keepdims=True)
        p = jnp.exp(s - m)
        l = jnp.sum(p, axis=-1, keepdims=True)
        p = p * pl.reciprocal(l, approx=True)   # EUP, VALU divide avoided
        oh = jnp.dot(p, vh, preferred_element_type=jnp.float32)        # (T,dh)
        # fold output projection per head: attn @ Wo == sum_h attn_h @ Wo[h]
        c = jnp.dot(oh, wo_ref[sl, :], preferred_element_type=jnp.float32)
        acc = c if acc is None else acc + c

    out = acc + bo_ref[...]

    # epilogue: residual add + LayerNorm (fused, no extra HBM pass)
    hsum = xq.astype(jnp.float32) + out
    mean = jnp.mean(hsum, axis=-1, keepdims=True)
    hc = hsum - mean
    var = jnp.mean(hc * hc, axis=-1, keepdims=True)
    y = hc * lax.rsqrt(var + eps)
    o_ref[0] = (y * g_ref[...] + b_ref[...]).astype(o_ref.dtype)


def _self_mha_kernel(x_ref, wqkv_ref, bqkv_ref, wo_ref, bo_ref, g_ref, b_ref,
                     o_ref, *, nhead, scale, eps, causal):
    x = x_ref[0]
    _mha_math(x, x, wqkv_ref, bqkv_ref, wo_ref, bo_ref, g_ref, b_ref, o_ref,
              nhead=nhead, scale=scale, eps=eps, causal=causal, fused_qkv=True)


def _cross_mha_kernel(xq_ref, xkv_ref, wqkv_ref, bqkv_ref, wo_ref, bo_ref,
                      g_ref, b_ref, o_ref, *, nhead, scale, eps, causal):
    _mha_math(xq_ref[0], xkv_ref[0], wqkv_ref, bqkv_ref, wo_ref, bo_ref, g_ref,
              b_ref, o_ref, nhead=nhead, scale=scale, eps=eps, causal=causal,
              fused_qkv=False)


def _ffn_ln_kernel(x_ref, res_ref, w1_ref, b1_ref, w2_ref, b2_ref, g_ref, b_ref,
                   o_ref, *, eps):
    """out = LayerNorm(x + relu(x@W1+b1)@W2+b2) + res  (Graformer '+tgt')."""
    x = x_ref[...]
    h = jnp.dot(x, w1_ref[...], preferred_element_type=jnp.float32) + b1_ref[...]
    h = jnp.maximum(h, 0.0)
    y = jnp.dot(h, w2_ref[...], preferred_element_type=jnp.float32) + b2_ref[...]
    z = x.astype(jnp.float32) + y
    mean = jnp.mean(z, axis=-1, keepdims=True)
    zc = z - mean
    var = jnp.mean(zc * zc, axis=-1, keepdims=True)
    out = zc * lax.rsqrt(var + eps) * g_ref[...] + b_ref[...]
    out = out + res_ref[...].astype(jnp.float32)
    o_ref[...] = out.astype(o_ref.dtype)


def _ln_kernel(x_ref, g_ref, b_ref, o_ref, *, eps):
    x = x_ref[...].astype(jnp.float32)
    mean = jnp.mean(x, axis=-1, keepdims=True)
    xc = x - mean
    var = jnp.mean(xc * xc, axis=-1, keepdims=True)
    o_ref[...] = (xc * lax.rsqrt(var + eps) * g_ref[...]
                  + b_ref[...]).astype(o_ref.dtype)


# ------------------------------ wrappers -----------------------------------

def _row_tile(M, target):
    """Largest multiple-of-8 row tile <= target that divides M, else full M."""
    if M <= target or M % 8 != 0:
        return M
    t = (min(target, M) // 8) * 8
    while t >= 8:
        if M % t == 0:
            return t
        t -= 8
    return M


def fused_mha_block(x_q, x_kv, p, gamma, beta, *, nhead, causal, eps=1e-5):
    """LayerNorm(x_q + MHA(x_q, x_kv)).  x_q:(B,T,D); x_kv:(B,S,D) or None
    (None => self-attention with a single fused QKV matmul)."""
    B, T, D = x_q.shape
    dh = D // nhead
    scale = 1.0 / math.sqrt(dh)
    dtype = x_q.dtype
    w_qkv = p["w_qkv"]
    b_qkv = p["b_qkv"].reshape(1, 3 * D)
    wo = p["wo"]
    bo = p["bo"].reshape(1, D)
    g2 = gamma.reshape(1, D)
    bt2 = beta.reshape(1, D)

    weight_specs = [
        pl.BlockSpec((D, 3 * D), lambda b: (0, 0)),
        pl.BlockSpec((1, 3 * D), lambda b: (0, 0)),
        pl.BlockSpec((D, D), lambda b: (0, 0)),
        pl.BlockSpec((1, D), lambda b: (0, 0)),
        pl.BlockSpec((1, D), lambda b: (0, 0)),
        pl.BlockSpec((1, D), lambda b: (0, 0)),
    ]
    cp = pltpu.CompilerParams(dimension_semantics=("parallel",),
                              vmem_limit_bytes=_VMEM_LIMIT)

    if x_kv is None:
        kernel = functools.partial(_self_mha_kernel, nhead=nhead, scale=scale,
                                   eps=eps, causal=causal)
        return pl.pallas_call(
            kernel,
            out_shape=jax.ShapeDtypeStruct((B, T, D), dtype),
            grid=(B,),
            in_specs=[pl.BlockSpec((1, T, D), lambda b: (b, 0, 0))] + weight_specs,
            out_specs=pl.BlockSpec((1, T, D), lambda b: (b, 0, 0)),
            compiler_params=cp,
        )(x_q, w_qkv, b_qkv, wo, bo, g2, bt2)

    S = x_kv.shape[1]
    kernel = functools.partial(_cross_mha_kernel, nhead=nhead, scale=scale,
                               eps=eps, causal=causal)
    return pl.pallas_call(
        kernel,
        out_shape=jax.ShapeDtypeStruct((B, T, D), dtype),
        grid=(B,),
        in_specs=[pl.BlockSpec((1, T, D), lambda b: (b, 0, 0)),
                  pl.BlockSpec((1, S, D), lambda b: (b, 0, 0))] + weight_specs,
        out_specs=pl.BlockSpec((1, T, D), lambda b: (b, 0, 0)),
        compiler_params=cp,
    )(x_q, x_kv, w_qkv, b_qkv, wo, bo, g2, bt2)


def fused_ffn_block(x, residual, w1, b1, w2, b2, gamma, beta, *, eps=1e-5,
                    row_block=512):
    """LayerNorm(x + FFN(x)) + residual, tiled over rows.  x,residual:(M,D)."""
    M, D = x.shape
    F = w1.shape[1]
    tm = _row_tile(M, row_block)
    return pl.pallas_call(
        functools.partial(_ffn_ln_kernel, eps=eps),
        out_shape=jax.ShapeDtypeStruct((M, D), x.dtype),
        grid=(M // tm,),
        in_specs=[
            pl.BlockSpec((tm, D), lambda i: (i, 0)),
            pl.BlockSpec((tm, D), lambda i: (i, 0)),
            pl.BlockSpec((D, F), lambda i: (0, 0)),
            pl.BlockSpec((1, F), lambda i: (0, 0)),
            pl.BlockSpec((F, D), lambda i: (0, 0)),
            pl.BlockSpec((1, D), lambda i: (0, 0)),
            pl.BlockSpec((1, D), lambda i: (0, 0)),
            pl.BlockSpec((1, D), lambda i: (0, 0)),
        ],
        out_specs=pl.BlockSpec((tm, D), lambda i: (i, 0)),
        compiler_params=pltpu.CompilerParams(
            dimension_semantics=("parallel",),
            vmem_limit_bytes=_VMEM_LIMIT),
    )(x, residual, w1, b1.reshape(1, F), w2, b2.reshape(1, D),
      gamma.reshape(1, D), beta.reshape(1, D))


def pallas_layernorm(x, gamma, beta, *, eps=1e-5, row_block=512):
    M, D = x.shape
    tm = _row_tile(M, row_block)
    return pl.pallas_call(
        functools.partial(_ln_kernel, eps=eps),
        out_shape=jax.ShapeDtypeStruct((M, D), x.dtype),
        grid=(M // tm,),
        in_specs=[pl.BlockSpec((tm, D), lambda i: (i, 0)),
                  pl.BlockSpec((1, D), lambda i: (0, 0)),
                  pl.BlockSpec((1, D), lambda i: (0, 0))],
        out_specs=pl.BlockSpec((tm, D), lambda i: (i, 0)),
        compiler_params=pltpu.CompilerParams(
            dimension_semantics=("parallel",),
            vmem_limit_bytes=_VMEM_LIMIT),
    )(x, gamma.reshape(1, D), beta.reshape(1, D))


# --------------------------- GraformerDecoder -------------------------------

def graformer_decoder(tgt, memory, params, *, nhead, eps=1e-5, row_block=512):
    """tgt:(T,B,D), memory:(S,B,D)  seq-first like PyTorch (batch_first=False).
    tgt_mask is causal, memory_mask / key-padding masks are None, eval mode."""
    T, B, D = tgt.shape
    # batch-first internally; only one transpose at entry and one at exit.
    x = jnp.transpose(tgt, (1, 0, 2))        # (B, T, D)
    mem = jnp.transpose(memory, (1, 0, 2))   # (B, S, D)
    tgt_rows = x.reshape(B * T, D)

    out = x
    for lp in params["layers"]:
        # x1 = LN1(x + SelfAttn(x))            (causal mask built in-kernel)
        h1 = fused_mha_block(out, None, lp["self_attn"], lp["n1g"], lp["n1b"],
                             nhead=nhead, causal=True, eps=eps)
        # x2 = LN2(x1 + CrossAttn(x1, memory)) (no mask)
        h2 = fused_mha_block(h1, mem, lp["cross_attn"], lp["n2g"], lp["n2b"],
                             nhead=nhead, causal=False, eps=eps)
        # x3 = LN3(x2 + FFN(x2)) + tgt         (Graformer residual fused in)
        out = fused_ffn_block(h2.reshape(B * T, D), tgt_rows,
                              lp["w1"], lp["b1"], lp["w2"], lp["b2"],
                              lp["n3g"], lp["n3b"], eps=eps,
                              row_block=row_block).reshape(B, T, D)

    if params.get("norm") is not None:
        g, b = params["norm"]
        out = pallas_layernorm(out.reshape(B * T, D), g, b, eps=eps,
                               row_block=row_block).reshape(B, T, D)
    return jnp.transpose(out, (1, 0, 2))     # back to (T, B, D)


# ----------------------- pure-jnp reference ---------------------------------

def _ref_layernorm(x, g, b, eps=1e-5):
    m = jnp.mean(x, -1, keepdims=True)
    v = jnp.mean((x - m) ** 2, -1, keepdims=True)
    return (x - m) * lax.rsqrt(v + eps) * g + b


def _ref_mha_block(x_q, x_kv, p, gamma, beta, *, nhead, causal, eps=1e-5):
    B, T, D = x_q.shape
    if x_kv is None:
        x_kv = x_q
    S = x_kv.shape[1]
    dh = D // nhead
    w, bqkv = p["w_qkv"], p["b_qkv"]
    q = x_q @ w[:, :D] + bqkv[:D]
    k = x_kv @ w[:, D:2 * D] + bqkv[D:2 * D]
    v = x_kv @ w[:, 2 * D:] + bqkv[2 * D:]
    q = q.reshape(B, T, nhead, dh)
    k = k.reshape(B, S, nhead, dh)
    v = v.reshape(B, S, nhead, dh)
    s = jnp.einsum("bthd,bshd->bhts", q, k) / math.sqrt(dh)
    if causal:
        keep = jnp.tril(jnp.ones((T, S), bool))
        s = jnp.where(keep[None, None], s, -1e30)
    a = jax.nn.softmax(s, axis=-1)
    o = jnp.einsum("bhts,bshd->bthd", a, v).reshape(B, T, D)
    o = o @ p["wo"] + p["bo"]
    return _ref_layernorm(x_q + o, gamma, beta, eps)


def _ref_ffn_block(x, residual, w1, b1, w2, b2, gamma, beta, eps=1e-5):
    h = jnp.maximum(x @ w1 + b1, 0.0)
    y = h @ w2 + b2
    return _ref_layernorm(x + y, gamma, beta, eps) + residual


def graformer_decoder_ref(tgt, memory, params, *, nhead, eps=1e-5):
    x = jnp.transpose(tgt, (1, 0, 2))
    mem = jnp.transpose(memory, (1, 0, 2))
    out = x
    for lp in params["layers"]:
        h1 = _ref_mha_block(out, None, lp["self_attn"], lp["n1g"], lp["n1b"],
                            nhead=nhead, causal=True, eps=eps)
        h2 = _ref_mha_block(h1, mem, lp["cross_attn"], lp["n2g"], lp["n2b"],
                            nhead=nhead, causal=False, eps=eps)
        out = _ref_ffn_block(h2, x, lp["w1"], lp["b1"], lp["w2"], lp["b2"],
                             lp["n3g"], lp["n3b"], eps=eps)
    if params.get("norm") is not None:
        g, b = params["norm"]
        out = _ref_layernorm(out, g, b, eps)
    return jnp.transpose(out, (1, 0, 2))


# --------------------------- parameter init ---------------------------------

def _rnd(key, shape, scale=0.08):
    return jax.random.normal(key, shape, jnp.float32) * scale


def init_attn_params(key, D):
    ks = jax.random.split(key, 4)
    return dict(w_qkv=_rnd(ks[0], (D, 3 * D)), b_qkv=_rnd(ks[1], (3 * D,)),
                wo=_rnd(ks[2], (D, D)), bo=_rnd(ks[3], (D,)))


def init_layer_params(key, D, F):
    ks = jax.random.split(key, 12)
    return dict(
        self_attn=init_attn_params(ks[0], D),
        cross_attn=init_attn_params(ks[1], D),
        w1=_rnd(ks[2], (D, F)), b1=_rnd(ks[3], (F,)),
        w2=_rnd(ks[4], (F, D)), b2=_rnd(ks[5], (D,)),
        n1g=1.0 + _rnd(ks[6], (D,)), n1b=_rnd(ks[7], (D,)),
        n2g=1.0 + _rnd(ks[8], (D,)), n2b=_rnd(ks[9], (D,)),
        n3g=1.0 + _rnd(ks[10], (D,)), n3b=_rnd(ks[11], (D,)),
    )


# --------------------------------- main --------------------------------------

if __name__ == "__main__":
    B, T, S, D, NHEAD, FF, NUM_LAYERS = 2, 8, 16, 32, 4, 64, 2

    key = jax.random.PRNGKey(0)
    k_tgt, k_mem, k_par, k_ng, k_nb = jax.random.split(key, 5)
    tgt = jax.random.normal(k_tgt, (T, B, D), jnp.float32)       # (T, B, D)
    memory = jax.random.normal(k_mem, (S, B, D), jnp.float32)    # (S, B, D)

    # _get_clones deep-copies one layer -> identical initial params per layer.
    layer_params = init_layer_params(k_par, D, FF)
    params = dict(
        layers=[layer_params] * NUM_LAYERS,
        norm=(1.0 + _rnd(k_ng, (D,)), _rnd(k_nb, (D,))),         # final LayerNorm
    )

    # row_block=8 exercises the multi-step row-tiled grid even at toy sizes;
    # at production sizes leave the default (512) per the tiling guidance.
    fwd = jax.jit(functools.partial(graformer_decoder, nhead=NHEAD, row_block=8))
    out = jax.block_until_ready(fwd(tgt, memory, params))

    ref = graformer_decoder_ref(tgt, memory, params, nhead=NHEAD)
    assert out.shape == (T, B, D)
    err = float(jnp.max(jnp.abs(out - ref)))
    assert err < 5e-3, f"max abs err {err}"
    print("KERNEL_OK")
</pallas_src>

<mosaic_0001>
module attributes {stable_mosaic.version = 11 : i64} {
  func.func @_cross_mha_kernel(%arg0: i32, %arg1: memref<1x8x32xf32, #tpu.memory_space<vmem>>, %arg2: memref<1x16x32xf32, #tpu.memory_space<vmem>>, %arg3: memref<32x96xf32, #tpu.memory_space<vmem>>, %arg4: memref<1x96xf32, #tpu.memory_space<vmem>>, %arg5: memref<32x32xf32, #tpu.memory_space<vmem>>, %arg6: memref<1x32xf32, #tpu.memory_space<vmem>>, %arg7: memref<1x32xf32, #tpu.memory_space<vmem>>, %arg8: memref<1x32xf32, #tpu.memory_space<vmem>>, %arg9: memref<1x8x32xf32, #tpu.memory_space<vmem>>) attributes {dimension_semantics = [#tpu.dimension_semantics<parallel>], iteration_bounds = array<i64: 2>, scalar_prefetch = 0 : i64, scratch_operands = 0 : i64, tpu.core_type = #tpu.core_type<tc>, window_params = [{transform_indices = @transform_0, window_bounds = array<i64: 1, 8, 32>}, {transform_indices = @transform_1, window_bounds = array<i64: 1, 16, 32>}, {pipeline_mode = #tpu.pipeline_mode<synchronous>, transform_indices = @transform_2, window_bounds = array<i64: 32, 96>}, {pipeline_mode = #tpu.pipeline_mode<synchronous>, transform_indices = @transform_3, window_bounds = array<i64: 1, 96>}, {pipeline_mode = #tpu.pipeline_mode<synchronous>, transform_indices = @transform_4, window_bounds = array<i64: 32, 32>}, {pipeline_mode = #tpu.pipeline_mode<synchronous>, transform_indices = @transform_5, window_bounds = array<i64: 1, 32>}, {pipeline_mode = #tpu.pipeline_mode<synchronous>, transform_indices = @transform_6, window_bounds = array<i64: 1, 32>}, {pipeline_mode = #tpu.pipeline_mode<synchronous>, transform_indices = @transform_7, window_bounds = array<i64: 1, 32>}, {transform_indices = @transform_8, window_bounds = array<i64: 1, 8, 32>}]} {
    %c0 = arith.constant 0 : index
    %c0_0 = arith.constant 0 : index
    %c0_1 = arith.constant 0 : index
    %0 = vector.load %arg1[%c0, %c0_0, %c0_1] : memref<1x8x32xf32, #tpu.memory_space<vmem>>, vector<1x8x32xf32>
    %1 = vector.shape_cast %0 : vector<1x8x32xf32> to vector<8x32xf32>
    %c0_2 = arith.constant 0 : index
    %c0_3 = arith.constant 0 : index
    %c0_4 = arith.constant 0 : index
    %2 = vector.load %arg2[%c0_2, %c0_3, %c0_4] : memref<1x16x32xf32, #tpu.memory_space<vmem>>, vector<1x16x32xf32>
    %3 = vector.shape_cast %2 : vector<1x16x32xf32> to vector<16x32xf32>
    %c0_5 = arith.constant 0 : index
    %c0_6 = arith.constant 0 : index
    %4 = vector.load %arg3[%c0_5, %c0_6] : memref<32x96xf32, #tpu.memory_space<vmem>>, vector<32x96xf32>
    %c0_7 = arith.constant 0 : index
    %c0_8 = arith.constant 0 : index
    %5 = vector.load %arg4[%c0_7, %c0_8] : memref<1x96xf32, #tpu.memory_space<vmem>>, vector<1x96xf32>
    %6 = vector.extract_strided_slice %4 {offsets = [0, 0], sizes = [32, 32], strides = [1, 1]} : vector<32x96xf32> to vector<32x32xf32>
    %cst = arith.constant dense<0.000000e+00> : vector<8x32xf32>
    %7 = tpu.matmul %1, %6, %cst {dimension_numbers = #tpu.dot_dimension_numbers<[1], [0], [0], [1], [0, 0, 1, 1], [], []>} : vector<8x32xf32>, vector<32x32xf32>, vector<8x32xf32> -> vector<8x32xf32>
    %8 = vector.extract_strided_slice %5 {offsets = [0, 0], sizes = [1, 32], strides = [1, 1]} : vector<1x96xf32> to vector<1x32xf32>
    %9 = vector.broadcast %8 : vector<1x32xf32> to vector<8x32xf32>
    %10 = arith.addf %7, %9 : vector<8x32xf32>
    %11 = vector.extract_strided_slice %4 {offsets = [0, 32], sizes = [32, 64], strides = [1, 1]} : vector<32x96xf32> to vector<32x64xf32>
    %cst_9 = arith.constant dense<0.000000e+00> : vector<16x64xf32>
    %12 = tpu.matmul %3, %11, %cst_9 {dimension_numbers = #tpu.dot_dimension_numbers<[1], [0], [0], [1], [0, 0, 1, 1], [], []>} : vector<16x32xf32>, vector<32x64xf32>, vector<16x64xf32> -> vector<16x64xf32>
    %13 = vector.extract_strided_slice %5 {offsets = [0, 32], sizes = [1, 64], strides = [1, 1]} : vector<1x96xf32> to vector<1x64xf32>
    %14 = vector.broadcast %13 : vector<1x64xf32> to vector<16x64xf32>
    %15 = arith.addf %12, %14 : vector<16x64xf32>
    %16 = vector.extract_strided_slice %15 {offsets = [0, 0], sizes = [16, 32], strides = [1, 1]} : vector<16x64xf32> to vector<16x32xf32>
    %17 = vector.extract_strided_slice %15 {offsets = [0, 32], sizes = [16, 32], strides = [1, 1]} : vector<16x64xf32> to vector<16x32xf32>
    %18 = vector.extract_strided_slice %10 {offsets = [0, 0], sizes = [8, 8], strides = [1, 1]} : vector<8x32xf32> to vector<8x8xf32>
    %19 = vector.extract_strided_slice %16 {offsets = [0, 0], sizes = [16, 8], strides = [1, 1]} : vector<16x32xf32> to vector<16x8xf32>
    %20 = vector.extract_strided_slice %17 {offsets = [0, 0], sizes = [16, 8], strides = [1, 1]} : vector<16x32xf32> to vector<16x8xf32>
    %cst_10 = arith.constant dense<0.000000e+00> : vector<8x16xf32>
    %21 = tpu.matmul %18, %19, %cst_10 {dimension_numbers = #tpu.dot_dimension_numbers<[1], [1], [0], [0], [0, 0, 1, 0], [], []>} : vector<8x8xf32>, vector<16x8xf32>, vector<8x16xf32> -> vector<8x16xf32>
    %cst_11 = arith.constant 0.353553385 : f32
    %22 = vector.broadcast %cst_11 : f32 to vector<8x16xf32>
    %23 = arith.mulf %21, %22 : vector<8x16xf32>
    %cst_12 = arith.constant dense<0xFF800000> : vector<8xf32>
    %24 = vector.multi_reduction <maximumf>, %23, %cst_12 [1] : vector<8x16xf32> to vector<8xf32>
    %25 = vector.shape_cast %24 : vector<8xf32> to vector<8x1xf32>
    %26 = vector.broadcast %25 : vector<8x1xf32> to vector<8x16xf32>
    %27 = arith.subf %23, %26 : vector<8x16xf32>
    %28 = math.exp %27 : vector<8x16xf32>
    %cst_13 = arith.constant dense<0.000000e+00> : vector<8xf32>
    %29 = vector.multi_reduction <add>, %28, %cst_13 [1] : vector<8x16xf32> to vector<8xf32>
    %30 = vector.shape_cast %29 : vector<8xf32> to vector<8x1xf32>
    %31 = tpu.reciprocal %30 {approx = true} : vector<8x1xf32> -> vector<8x1xf32>
    %32 = vector.broadcast %31 : vector<8x1xf32> to vector<8x16xf32>
    %33 = arith.mulf %28, %32 : vector<8x16xf32>
    %cst_14 = arith.constant dense<0.000000e+00> : vector<8x8xf32>
    %34 = tpu.matmul %33, %20, %cst_14 {dimension_numbers = #tpu.dot_dimension_numbers<[1], [0], [0], [1], [0, 0, 1, 1], [], []>} : vector<8x16xf32>, vector<16x8xf32>, vector<8x8xf32> -> vector<8x8xf32>
    %c0_15 = arith.constant 0 : index
    %c0_16 = arith.constant 0 : index
    %35 = vector.load %arg5[%c0_15, %c0_16] : memref<32x32xf32, #tpu.memory_space<vmem>>, vector<8x32xf32>
    %cst_17 = arith.constant dense<0.000000e+00> : vector<8x32xf32>
    %36 = tpu.matmul %34, %35, %cst_17 {dimension_numbers = #tpu.dot_dimension_numbers<[1], [0], [0], [1], [0, 0, 1, 1], [], []>} : vector<8x8xf32>, vector<8x32xf32>, vector<8x32xf32> -> vector<8x32xf32>
    %37 = vector.extract_strided_slice %10 {offsets = [0, 8], sizes = [8, 8], strides = [1, 1]} : vector<8x32xf32> to vector<8x8xf32>
    %38 = vector.extract_strided_slice %16 {offsets = [0, 8], sizes = [16, 8], strides = [1, 1]} : vector<16x32xf32> to vector<16x8xf32>
    %39 = vector.extract_strided_slice %17 {offsets = [0, 8], sizes = [16, 8], strides = [1, 1]} : vector<16x32xf32> to vector<16x8xf32>
    %cst_18 = arith.constant dense<0.000000e+00> : vector<8x16xf32>
    %40 = tpu.matmul %37, %38, %cst_18 {dimension_numbers = #tpu.dot_dimension_numbers<[1], [1], [0], [0], [0, 0, 1, 0], [], []>} : vector<8x8xf32>, vector<16x8xf32>, vector<8x16xf32> -> vector<8x16xf32>
    %cst_19 = arith.constant 0.353553385 : f32
    %41 = vector.broadcast %cst_19 : f32 to vector<8x16xf32>
    %42 = arith.mulf %40, %41 : vector<8x16xf32>
    %cst_20 = arith.constant dense<0xFF800000> : vector<8xf32>
    %43 = vector.multi_reduction <maximumf>, %42, %cst_20 [1] : vector<8x16xf32> to vector<8xf32>
    %44 = vector.shape_cast %43 : vector<8xf32> to vector<8x1xf32>
    %45 = vector.broadcast %44 : vector<8x1xf32> to vector<8x16xf32>
    %46 = arith.subf %42, %45 : vector<8x16xf32>
    %47 = math.exp %46 : vector<8x16xf32>
    %cst_21 = arith.constant dense<0.000000e+00> : vector<8xf32>
    %48 = vector.multi_reduction <add>, %47, %cst_21 [1] : vector<8x16xf32> to vector<8xf32>
    %49 = vector.shape_cast %48 : vector<8xf32> to vector<8x1xf32>
    %50 = tpu.reciprocal %49 {approx = true} : vector<8x1xf32> -> vector<8x1xf32>
    %51 = vector.broadcast %50 : vector<8x1xf32> to vector<8x16xf32>
    %52 = arith.mulf %47, %51 : vector<8x16xf32>
    %cst_22 = arith.constant dense<0.000000e+00> : vector<8x8xf32>
    %53 = tpu.matmul %52, %39, %cst_22 {dimension_numbers = #tpu.dot_dimension_numbers<[1], [0], [0], [1], [0, 0, 1, 1], [], []>} : vector<8x16xf32>, vector<16x8xf32>, vector<8x8xf32> -> vector<8x8xf32>
    %c8 = arith.constant 8 : index
    %c0_23 = arith.constant 0 : index
    %54 = vector.load %arg5[%c8, %c0_23] : memref<32x32xf32, #tpu.memory_space<vmem>>, vector<8x32xf32>
    %cst_24 = arith.constant dense<0.000000e+00> : vector<8x32xf32>
    %55 = tpu.matmul %53, %54, %cst_24 {dimension_numbers = #tpu.dot_dimension_numbers<[1], [0], [0], [1], [0, 0, 1, 1], [], []>} : vector<8x8xf32>, vector<8x32xf32>, vector<8x32xf32> -> vector<8x32xf32>
    %56 = arith.addf %36, %55 : vector<8x32xf32>
    %57 = vector.extract_strided_slice %10 {offsets = [0, 16], sizes = [8, 8], strides = [1, 1]} : vector<8x32xf32> to vector<8x8xf32>
    %58 = vector.extract_strided_slice %16 {offsets = [0, 16], sizes = [16, 8], strides = [1, 1]} : vector<16x32xf32> to vector<16x8xf32>
    %59 = vector.extract_strided_slice %17 {offsets = [0, 16], sizes = [16, 8], strides = [1, 1]} : vector<16x32xf32> to vector<16x8xf32>
    %cst_25 = arith.constant dense<0.000000e+00> : vector<8x16xf32>
    %60 = tpu.matmul %57, %58, %cst_25 {dimension_numbers = #tpu.dot_dimension_numbers<[1], [1], [0], [0], [0, 0, 1, 0], [], []>} : vector<8x8xf32>, vector<16x8xf32>, vector<8x16xf32> -> vector<8x16xf32>
    %cst_26 = arith.constant 0.353553385 : f32
    %61 = vector.broadcast %cst_26 : f32 to vector<8x16xf32>
    %62 = arith.mulf %60, %61 : vector<8x16xf32>
    %cst_27 = arith.constant dense<0xFF800000> : vector<8xf32>
    %63 = vector.multi_reduction <maximumf>, %62, %cst_27 [1] : vector<8x16xf32> to vector<8xf32>
    %64 = vector.shape_cast %63 : vector<8xf32> to vector<8x1xf32>
    %65 = vector.broadcast %64 : vector<8x1xf32> to vector<8x16xf32>
    %66 = arith.subf %62, %65 : vector<8x16xf32>
    %67 = math.exp %66 : vector<8x16xf32>
    %cst_28 = arith.constant dense<0.000000e+00> : vector<8xf32>
    %68 = vector.multi_reduction <add>, %67, %cst_28 [1] : vector<8x16xf32> to vector<8xf32>
    %69 = vector.shape_cast %68 : vector<8xf32> to vector<8x1xf32>
    %70 = tpu.reciprocal %69 {approx = true} : vector<8x1xf32> -> vector<8x1xf32>
    %71 = vector.broadcast %70 : vector<8x1xf32> to vector<8x16xf32>
    %72 = arith.mulf %67, %71 : vector<8x16xf32>
    %cst_29 = arith.constant dense<0.000000e+00> : vector<8x8xf32>
    %73 = tpu.matmul %72, %59, %cst_29 {dimension_numbers = #tpu.dot_dimension_numbers<[1], [0], [0], [1], [0, 0, 1, 1], [], []>} : vector<8x16xf32>, vector<16x8xf32>, vector<8x8xf32> -> vector<8x8xf32>
    %c16 = arith.constant 16 : index
    %c0_30 = arith.constant 0 : index
    %74 = vector.load %arg5[%c16, %c0_30] : memref<32x32xf32, #tpu.memory_space<vmem>>, vector<8x32xf32>
    %cst_31 = arith.constant dense<0.000000e+00> : vector<8x32xf32>
    %75 = tpu.matmul %73, %74, %cst_31 {dimension_numbers = #tpu.dot_dimension_numbers<[1], [0], [0], [1], [0, 0, 1, 1], [], []>} : vector<8x8xf32>, vector<8x32xf32>, vector<8x32xf32> -> vector<8x32xf32>
    %76 = arith.addf %56, %75 : vector<8x32xf32>
    %77 = vector.extract_strided_slice %10 {offsets = [0, 24], sizes = [8, 8], strides = [1, 1]} : vector<8x32xf32> to vector<8x8xf32>
    %78 = vector.extract_strided_slice %16 {offsets = [0, 24], sizes = [16, 8], strides = [1, 1]} : vector<16x32xf32> to vector<16x8xf32>
    %79 = vector.extract_strided_slice %17 {offsets = [0, 24], sizes = [16, 8], strides = [1, 1]} : vector<16x32xf32> to vector<16x8xf32>
    %cst_32 = arith.constant dense<0.000000e+00> : vector<8x16xf32>
    %80 = tpu.matmul %77, %78, %cst_32 {dimension_numbers = #tpu.dot_dimension_numbers<[1], [1], [0], [0], [0, 0, 1, 0], [], []>} : vector<8x8xf32>, vector<16x8xf32>, vector<8x16xf32> -> vector<8x16xf32>
    %cst_33 = arith.constant 0.353553385 : f32
    %81 = vector.broadcast %cst_33 : f32 to vector<8x16xf32>
    %82 = arith.mulf %80, %81 : vector<8x16xf32>
    %cst_34 = arith.constant dense<0xFF800000> : vector<8xf32>
    %83 = vector.multi_reduction <maximumf>, %82, %cst_34 [1] : vector<8x16xf32> to vector<8xf32>
    %84 = vector.shape_cast %83 : vector<8xf32> to vector<8x1xf32>
    %85 = vector.broadcast %84 : vector<8x1xf32> to vector<8x16xf32>
    %86 = arith.subf %82, %85 : vector<8x16xf32>
    %87 = math.exp %86 : vector<8x16xf32>
    %cst_35 = arith.constant dense<0.000000e+00> : vector<8xf32>
    %88 = vector.multi_reduction <add>, %87, %cst_35 [1] : vector<8x16xf32> to vector<8xf32>
    %89 = vector.shape_cast %88 : vector<8xf32> to vector<8x1xf32>
    %90 = tpu.reciprocal %89 {approx = true} : vector<8x1xf32> -> vector<8x1xf32>
    %91 = vector.broadcast %90 : vector<8x1xf32> to vector<8x16xf32>
    %92 = arith.mulf %87, %91 : vector<8x16xf32>
    %cst_36 = arith.constant dense<0.000000e+00> : vector<8x8xf32>
    %93 = tpu.matmul %92, %79, %cst_36 {dimension_numbers = #tpu.dot_dimension_numbers<[1], [0], [0], [1], [0, 0, 1, 1], [], []>} : vector<8x16xf32>, vector<16x8xf32>, vector<8x8xf32> -> vector<8x8xf32>
    %c24 = arith.constant 24 : index
    %c0_37 = arith.constant 0 : index
    %94 = vector.load %arg5[%c24, %c0_37] : memref<32x32xf32, #tpu.memory_space<vmem>>, vector<8x32xf32>
    %cst_38 = arith.constant dense<0.000000e+00> : vector<8x32xf32>
    %95 = tpu.matmul %93, %94, %cst_38 {dimension_numbers = #tpu.dot_dimension_numbers<[1], [0], [0], [1], [0, 0, 1, 1], [], []>} : vector<8x8xf32>, vector<8x32xf32>, vector<8x32xf32> -> vector<8x32xf32>
    %96 = arith.addf %76, %95 : vector<8x32xf32>
    %c0_39 = arith.constant 0 : index
    %c0_40 = arith.constant 0 : index
    %97 = vector.load %arg6[%c0_39, %c0_40] : memref<1x32xf32, #tpu.memory_space<vmem>>, vector<1x32xf32>
    %98 = vector.broadcast %97 : vector<1x32xf32> to vector<8x32xf32>
    %99 = arith.addf %96, %98 : vector<8x32xf32>
    %100 = arith.addf %1, %99 : vector<8x32xf32>
    %cst_41 = arith.constant dense<0.000000e+00> : vector<8xf32>
    %101 = vector.multi_reduction <add>, %100, %cst_41 [1] : vector<8x32xf32> to vector<8xf32>
    %102 = vector.shape_cast %101 : vector<8xf32> to vector<8x1xf32>
    %cst_42 = arith.constant 3.200000e+01 : f32
    %103 = vector.broadcast %cst_42 : f32 to vector<8x1xf32>
    %104 = arith.divf %102, %103 : vector<8x1xf32>
    %105 = vector.broadcast %104 : vector<8x1xf32> to vector<8x32xf32>
    %106 = arith.subf %100, %105 : vector<8x32xf32>
    %107 = arith.mulf %106, %106 : vector<8x32xf32>
    %cst_43 = arith.constant dense<0.000000e+00> : vector<8xf32>
    %108 = vector.multi_reduction <add>, %107, %cst_43 [1] : vector<8x32xf32> to vector<8xf32>
    %109 = vector.shape_cast %108 : vector<8xf32> to vector<8x1xf32>
    %cst_44 = arith.constant 3.200000e+01 : f32
    %110 = vector.broadcast %cst_44 : f32 to vector<8x1xf32>
    %111 = arith.divf %109, %110 : vector<8x1xf32>
    %cst_45 = arith.constant 9.99999974E-6 : f32
    %112 = vector.broadcast %cst_45 : f32 to vector<8x1xf32>
    %113 = arith.addf %111, %112 : vector<8x1xf32>
    %114 = math.rsqrt %113 : vector<8x1xf32>
    %115 = vector.broadcast %114 : vector<8x1xf32> to vector<8x32xf32>
    %116 = arith.mulf %106, %115 : vector<8x32xf32>
    %c0_46 = arith.constant 0 : index
    %c0_47 = arith.constant 0 : index
    %117 = vector.load %arg7[%c0_46, %c0_47] : memref<1x32xf32, #tpu.memory_space<vmem>>, vector<1x32xf32>
    %118 = vector.broadcast %117 : vector<1x32xf32> to vector<8x32xf32>
    %119 = arith.mulf %116, %118 : vector<8x32xf32>
    %c0_48 = arith.constant 0 : index
    %c0_49 = arith.constant 0 : index
    %120 = vector.load %arg8[%c0_48, %c0_49] : memref<1x32xf32, #tpu.memory_space<vmem>>, vector<1x32xf32>
    %121 = vector.broadcast %120 : vector<1x32xf32> to vector<8x32xf32>
    %122 = arith.addf %119, %121 : vector<8x32xf32>
    %c0_50 = arith.constant 0 : index
    %c0_51 = arith.constant 0 : index
    %c0_52 = arith.constant 0 : index
    %123 = vector.load %arg9[%c0_50, %c0_51, %c0_52] : memref<1x8x32xf32, #tpu.memory_space<vmem>>, vector<1x8x32xf32>
    %124 = vector.shape_cast %123 : vector<1x8x32xf32> to vector<8x32xf32>
    %125 = vector.shape_cast %122 : vector<8x32xf32> to vector<1x8x32xf32>
    tpu.vector_store %arg9[%c0_50, %c0_51, %c0_52], %125 {strides = array<i32>} : memref<1x8x32xf32, #tpu.memory_space<vmem>>, vector<1x8x32xf32>,
    return
  }
  func.func @transform_0(%arg0: i32) -> (i32, i32, i32) {
    %c0_i32 = arith.constant 0 : i32
    %c0_i32_0 = arith.constant 0 : i32
    %c0_i32_1 = arith.constant 0 : i32
    return %arg0, %c0_i32, %c0_i32_0 : i32, i32, i32
  }
  func.func @transform_1(%arg0: i32) -> (i32, i32, i32) {
    %c0_i32 = arith.constant 0 : i32
    %c0_i32_0 = arith.constant 0 : i32
    %c0_i32_1 = arith.constant 0 : i32
    return %arg0, %c0_i32, %c0_i32_0 : i32, i32, i32
  }
  func.func @transform_2(%arg0: i32) -> (i32, i32) {
    %c0_i32 = arith.constant 0 : i32
    %c0_i32_0 = arith.constant 0 : i32
    %c0_i32_1 = arith.constant 0 : i32
    return %c0_i32, %c0_i32_0 : i32, i32
  }
  func.func @transform_3(%arg0: i32) -> (i32, i32) {
    %c0_i32 = arith.constant 0 : i32
    %c0_i32_0 = arith.constant 0 : i32
    %c0_i32_1 = arith.constant 0 : i32
    return %c0_i32, %c0_i32_0 : i32, i32
  }
  func.func @transform_4(%arg0: i32) -> (i32, i32) {
    %c0_i32 = arith.constant 0 : i32
    %c0_i32_0 = arith.constant 0 : i32
    %c0_i32_1 = arith.constant 0 : i32
    return %c0_i32, %c0_i32_0 : i32, i32
  }
  func.func @transform_5(%arg0: i32) -> (i32, i32) {
    %c0_i32 = arith.constant 0 : i32
    %c0_i32_0 = arith.constant 0 : i32
    %c0_i32_1 = arith.constant 0 : i32
    return %c0_i32, %c0_i32_0 : i32, i32
  }
  func.func @transform_6(%arg0: i32) -> (i32, i32) {
    %c0_i32 = arith.constant 0 : i32
    %c0_i32_0 = arith.constant 0 : i32
    %c0_i32_1 = arith.constant 0 : i32
    return %c0_i32, %c0_i32_0 : i32, i32
  }
  func.func @transform_7(%arg0: i32) -> (i32, i32) {
    %c0_i32 = arith.constant 0 : i32
    %c0_i32_0 = arith.constant 0 : i32
    %c0_i32_1 = arith.constant 0 : i32
    return %c0_i32, %c0_i32_0 : i32, i32
  }
  func.func @transform_8(%arg0: i32) -> (i32, i32, i32) {
    %c0_i32 = arith.constant 0 : i32
    %c0_i32_0 = arith.constant 0 : i32
    %c0_i32_1 = arith.constant 0 : i32
    return %arg0, %c0_i32, %c0_i32_0 : i32, i32, i32
  }
}

module attributes {stable_mosaic.version = 11 : i64} {
  func.func @_self_mha_kernel(%arg0: i32, %arg1: memref<1x8x32xf32, #tpu.memory_space<vmem>>, %arg2: memref<32x96xf32, #tpu.memory_space<vmem>>, %arg3: memref<1x96xf32, #tpu.memory_space<vmem>>, %arg4: memref<32x32xf32, #tpu.memory_space<vmem>>, %arg5: memref<1x32xf32, #tpu.memory_space<vmem>>, %arg6: memref<1x32xf32, #tpu.memory_space<vmem>>, %arg7: memref<1x32xf32, #tpu.memory_space<vmem>>, %arg8: memref<1x8x32xf32, #tpu.memory_space<vmem>>) attributes {dimension_semantics = [#tpu.dimension_semantics<parallel>], iteration_bounds = array<i64: 2>, scalar_prefetch = 0 : i64, scratch_operands = 0 : i64, tpu.core_type = #tpu.core_type<tc>, window_params = [{transform_indices = @transform_0, window_bounds = array<i64: 1, 8, 32>}, {pipeline_mode = #tpu.pipeline_mode<synchronous>, transform_indices = @transform_1, window_bounds = array<i64: 32, 96>}, {pipeline_mode = #tpu.pipeline_mode<synchronous>, transform_indices = @transform_2, window_bounds = array<i64: 1, 96>}, {pipeline_mode = #tpu.pipeline_mode<synchronous>, transform_indices = @transform_3, window_bounds = array<i64: 32, 32>}, {pipeline_mode = #tpu.pipeline_mode<synchronous>, transform_indices = @transform_4, window_bounds = array<i64: 1, 32>}, {pipeline_mode = #tpu.pipeline_mode<synchronous>, transform_indices = @transform_5, window_bounds = array<i64: 1, 32>}, {pipeline_mode = #tpu.pipeline_mode<synchronous>, transform_indices = @transform_6, window_bounds = array<i64: 1, 32>}, {transform_indices = @transform_7, window_bounds = array<i64: 1, 8, 32>}]} {
    %c0 = arith.constant 0 : index
    %c0_0 = arith.constant 0 : index
    %c0_1 = arith.constant 0 : index
    %0 = vector.load %arg1[%c0, %c0_0, %c0_1] : memref<1x8x32xf32, #tpu.memory_space<vmem>>, vector<1x8x32xf32>
    %1 = vector.shape_cast %0 : vector<1x8x32xf32> to vector<8x32xf32>
    %c0_2 = arith.constant 0 : index
    %c0_3 = arith.constant 0 : index
    %2 = vector.load %arg2[%c0_2, %c0_3] : memref<32x96xf32, #tpu.memory_space<vmem>>, vector<32x96xf32>
    %c0_4 = arith.constant 0 : index
    %c0_5 = arith.constant 0 : index
    %3 = vector.load %arg3[%c0_4, %c0_5] : memref<1x96xf32, #tpu.memory_space<vmem>>, vector<1x96xf32>
    %cst = arith.constant dense<0.000000e+00> : vector<8x96xf32>
    %4 = tpu.matmul %1, %2, %cst {dimension_numbers = #tpu.dot_dimension_numbers<[1], [0], [0], [1], [0, 0, 1, 1], [], []>} : vector<8x32xf32>, vector<32x96xf32>, vector<8x96xf32> -> vector<8x96xf32>
    %5 = vector.broadcast %3 : vector<1x96xf32> to vector<8x96xf32>
    %6 = arith.addf %4, %5 : vector<8x96xf32>
    %7 = vector.extract_strided_slice %6 {offsets = [0, 0], sizes = [8, 32], strides = [1, 1]} : vector<8x96xf32> to vector<8x32xf32>
    %8 = vector.extract_strided_slice %6 {offsets = [0, 32], sizes = [8, 32], strides = [1, 1]} : vector<8x96xf32> to vector<8x32xf32>
    %9 = vector.extract_strided_slice %6 {offsets = [0, 64], sizes = [8, 32], strides = [1, 1]} : vector<8x96xf32> to vector<8x32xf32>
    %10 = tpu.iota {dimensions = array<i32: 0>} : vector<8x8xi32>
    %11 = tpu.iota {dimensions = array<i32: 1>} : vector<8x8xi32>
    %12 = arith.cmpi sge, %10, %11 : vector<8x8xi32>
    %13 = vector.extract_strided_slice %7 {offsets = [0, 0], sizes = [8, 8], strides = [1, 1]} : vector<8x32xf32> to vector<8x8xf32>
    %14 = vector.extract_strided_slice %8 {offsets = [0, 0], sizes = [8, 8], strides = [1, 1]} : vector<8x32xf32> to vector<8x8xf32>
    %15 = vector.extract_strided_slice %9 {offsets = [0, 0], sizes = [8, 8], strides = [1, 1]} : vector<8x32xf32> to vector<8x8xf32>
    %cst_6 = arith.constant dense<0.000000e+00> : vector<8x8xf32>
    %16 = tpu.matmul %13, %14, %cst_6 {dimension_numbers = #tpu.dot_dimension_numbers<[1], [1], [0], [0], [0, 0, 1, 0], [], []>} : vector<8x8xf32>, vector<8x8xf32>, vector<8x8xf32> -> vector<8x8xf32>
    %cst_7 = arith.constant 0.353553385 : f32
    %17 = vector.broadcast %cst_7 : f32 to vector<8x8xf32>
    %18 = arith.mulf %16, %17 : vector<8x8xf32>
    %cst_8 = arith.constant -1.000000e+30 : f32
    %19 = vector.broadcast %cst_8 : f32 to vector<8x8xf32>
    %20 = arith.select %12, %18, %19 : vector<8x8xi1>, vector<8x8xf32>
    %cst_9 = arith.constant dense<0xFF800000> : vector<8xf32>
    %21 = vector.multi_reduction <maximumf>, %20, %cst_9 [1] : vector<8x8xf32> to vector<8xf32>
    %22 = vector.shape_cast %21 : vector<8xf32> to vector<8x1xf32>
    %23 = vector.broadcast %22 : vector<8x1xf32> to vector<8x8xf32>
    %24 = arith.subf %20, %23 : vector<8x8xf32>
    %25 = math.exp %24 : vector<8x8xf32>
    %cst_10 = arith.constant dense<0.000000e+00> : vector<8xf32>
    %26 = vector.multi_reduction <add>, %25, %cst_10 [1] : vector<8x8xf32> to vector<8xf32>
    %27 = vector.shape_cast %26 : vector<8xf32> to vector<8x1xf32>
    %28 = tpu.reciprocal %27 {approx = true} : vector<8x1xf32> -> vector<8x1xf32>
    %29 = vector.broadcast %28 : vector<8x1xf32> to vector<8x8xf32>
    %30 = arith.mulf %25, %29 : vector<8x8xf32>
    %cst_11 = arith.constant dense<0.000000e+00> : vector<8x8xf32>
    %31 = tpu.matmul %30, %15, %cst_11 {dimension_numbers = #tpu.dot_dimension_numbers<[1], [0], [0], [1], [0, 0, 1, 1], [], []>} : vector<8x8xf32>, vector<8x8xf32>, vector<8x8xf32> -> vector<8x8xf32>
    %c0_12 = arith.constant 0 : index
    %c0_13 = arith.constant 0 : index
    %32 = vector.load %arg4[%c0_12, %c0_13] : memref<32x32xf32, #tpu.memory_space<vmem>>, vector<8x32xf32>
    %cst_14 = arith.constant dense<0.000000e+00> : vector<8x32xf32>
    %33 = tpu.matmul %31, %32, %cst_14 {dimension_numbers = #tpu.dot_dimension_numbers<[1], [0], [0], [1], [0, 0, 1, 1], [], []>} : vector<8x8xf32>, vector<8x32xf32>, vector<8x32xf32> -> vector<8x32xf32>
    %34 = vector.extract_strided_slice %7 {offsets = [0, 8], sizes = [8, 8], strides = [1, 1]} : vector<8x32xf32> to vector<8x8xf32>
    %35 = vector.extract_strided_slice %8 {offsets = [0, 8], sizes = [8, 8], strides = [1, 1]} : vector<8x32xf32> to vector<8x8xf32>
    %36 = vector.extract_strided_slice %9 {offsets = [0, 8], sizes = [8, 8], strides = [1, 1]} : vector<8x32xf32> to vector<8x8xf32>
    %cst_15 = arith.constant dense<0.000000e+00> : vector<8x8xf32>
    %37 = tpu.matmul %34, %35, %cst_15 {dimension_numbers = #tpu.dot_dimension_numbers<[1], [1], [0], [0], [0, 0, 1, 0], [], []>} : vector<8x8xf32>, vector<8x8xf32>, vector<8x8xf32> -> vector<8x8xf32>
    %cst_16 = arith.constant 0.353553385 : f32
    %38 = vector.broadcast %cst_16 : f32 to vector<8x8xf32>
    %39 = arith.mulf %37, %38 : vector<8x8xf32>
    %cst_17 = arith.constant -1.000000e+30 : f32
    %40 = vector.broadcast %cst_17 : f32 to vector<8x8xf32>
    %41 = arith.select %12, %39, %40 : vector<8x8xi1>, vector<8x8xf32>
    %cst_18 = arith.constant dense<0xFF800000> : vector<8xf32>
    %42 = vector.multi_reduction <maximumf>, %41, %cst_18 [1] : vector<8x8xf32> to vector<8xf32>
    %43 = vector.shape_cast %42 : vector<8xf32> to vector<8x1xf32>
    %44 = vector.broadcast %43 : vector<8x1xf32> to vector<8x8xf32>
    %45 = arith.subf %41, %44 : vector<8x8xf32>
    %46 = math.exp %45 : vector<8x8xf32>
    %cst_19 = arith.constant dense<0.000000e+00> : vector<8xf32>
    %47 = vector.multi_reduction <add>, %46, %cst_19 [1] : vector<8x8xf32> to vector<8xf32>
    %48 = vector.shape_cast %47 : vector<8xf32> to vector<8x1xf32>
    %49 = tpu.reciprocal %48 {approx = true} : vector<8x1xf32> -> vector<8x1xf32>
    %50 = vector.broadcast %49 : vector<8x1xf32> to vector<8x8xf32>
    %51 = arith.mulf %46, %50 : vector<8x8xf32>
    %cst_20 = arith.constant dense<0.000000e+00> : vector<8x8xf32>
    %52 = tpu.matmul %51, %36, %cst_20 {dimension_numbers = #tpu.dot_dimension_numbers<[1], [0], [0], [1], [0, 0, 1, 1], [], []>} : vector<8x8xf32>, vector<8x8xf32>, vector<8x8xf32> -> vector<8x8xf32>
    %c8 = arith.constant 8 : index
    %c0_21 = arith.constant 0 : index
    %53 = vector.load %arg4[%c8, %c0_21] : memref<32x32xf32, #tpu.memory_space<vmem>>, vector<8x32xf32>
    %cst_22 = arith.constant dense<0.000000e+00> : vector<8x32xf32>
    %54 = tpu.matmul %52, %53, %cst_22 {dimension_numbers = #tpu.dot_dimension_numbers<[1], [0], [0], [1], [0, 0, 1, 1], [], []>} : vector<8x8xf32>, vector<8x32xf32>, vector<8x32xf32> -> vector<8x32xf32>
    %55 = arith.addf %33, %54 : vector<8x32xf32>
    %56 = vector.extract_strided_slice %7 {offsets = [0, 16], sizes = [8, 8], strides = [1, 1]} : vector<8x32xf32> to vector<8x8xf32>
    %57 = vector.extract_strided_slice %8 {offsets = [0, 16], sizes = [8, 8], strides = [1, 1]} : vector<8x32xf32> to vector<8x8xf32>
    %58 = vector.extract_strided_slice %9 {offsets = [0, 16], sizes = [8, 8], strides = [1, 1]} : vector<8x32xf32> to vector<8x8xf32>
    %cst_23 = arith.constant dense<0.000000e+00> : vector<8x8xf32>
    %59 = tpu.matmul %56, %57, %cst_23 {dimension_numbers = #tpu.dot_dimension_numbers<[1], [1], [0], [0], [0, 0, 1, 0], [], []>} : vector<8x8xf32>, vector<8x8xf32>, vector<8x8xf32> -> vector<8x8xf32>
    %cst_24 = arith.constant 0.353553385 : f32
    %60 = vector.broadcast %cst_24 : f32 to vector<8x8xf32>
    %61 = arith.mulf %59, %60 : vector<8x8xf32>
    %cst_25 = arith.constant -1.000000e+30 : f32
    %62 = vector.broadcast %cst_25 : f32 to vector<8x8xf32>
    %63 = arith.select %12, %61, %62 : vector<8x8xi1>, vector<8x8xf32>
    %cst_26 = arith.constant dense<0xFF800000> : vector<8xf32>
    %64 = vector.multi_reduction <maximumf>, %63, %cst_26 [1] : vector<8x8xf32> to vector<8xf32>
    %65 = vector.shape_cast %64 : vector<8xf32> to vector<8x1xf32>
    %66 = vector.broadcast %65 : vector<8x1xf32> to vector<8x8xf32>
    %67 = arith.subf %63, %66 : vector<8x8xf32>
    %68 = math.exp %67 : vector<8x8xf32>
    %cst_27 = arith.constant dense<0.000000e+00> : vector<8xf32>
    %69 = vector.multi_reduction <add>, %68, %cst_27 [1] : vector<8x8xf32> to vector<8xf32>
    %70 = vector.shape_cast %69 : vector<8xf32> to vector<8x1xf32>
    %71 = tpu.reciprocal %70 {approx = true} : vector<8x1xf32> -> vector<8x1xf32>
    %72 = vector.broadcast %71 : vector<8x1xf32> to vector<8x8xf32>
    %73 = arith.mulf %68, %72 : vector<8x8xf32>
    %cst_28 = arith.constant dense<0.000000e+00> : vector<8x8xf32>
    %74 = tpu.matmul %73, %58, %cst_28 {dimension_numbers = #tpu.dot_dimension_numbers<[1], [0], [0], [1], [0, 0, 1, 1], [], []>} : vector<8x8xf32>, vector<8x8xf32>, vector<8x8xf32> -> vector<8x8xf32>
    %c16 = arith.constant 16 : index
    %c0_29 = arith.constant 0 : index
    %75 = vector.load %arg4[%c16, %c0_29] : memref<32x32xf32, #tpu.memory_space<vmem>>, vector<8x32xf32>
    %cst_30 = arith.constant dense<0.000000e+00> : vector<8x32xf32>
    %76 = tpu.matmul %74, %75, %cst_30 {dimension_numbers = #tpu.dot_dimension_numbers<[1], [0], [0], [1], [0, 0, 1, 1], [], []>} : vector<8x8xf32>, vector<8x32xf32>, vector<8x32xf32> -> vector<8x32xf32>
    %77 = arith.addf %55, %76 : vector<8x32xf32>
    %78 = vector.extract_strided_slice %7 {offsets = [0, 24], sizes = [8, 8], strides = [1, 1]} : vector<8x32xf32> to vector<8x8xf32>
    %79 = vector.extract_strided_slice %8 {offsets = [0, 24], sizes = [8, 8], strides = [1, 1]} : vector<8x32xf32> to vector<8x8xf32>
    %80 = vector.extract_strided_slice %9 {offsets = [0, 24], sizes = [8, 8], strides = [1, 1]} : vector<8x32xf32> to vector<8x8xf32>
    %cst_31 = arith.constant dense<0.000000e+00> : vector<8x8xf32>
    %81 = tpu.matmul %78, %79, %cst_31 {dimension_numbers = #tpu.dot_dimension_numbers<[1], [1], [0], [0], [0, 0, 1, 0], [], []>} : vector<8x8xf32>, vector<8x8xf32>, vector<8x8xf32> -> vector<8x8xf32>
    %cst_32 = arith.constant 0.353553385 : f32
    %82 = vector.broadcast %cst_32 : f32 to vector<8x8xf32>
    %83 = arith.mulf %81, %82 : vector<8x8xf32>
    %cst_33 = arith.constant -1.000000e+30 : f32
    %84 = vector.broadcast %cst_33 : f32 to vector<8x8xf32>
    %85 = arith.select %12, %83, %84 : vector<8x8xi1>, vector<8x8xf32>
    %cst_34 = arith.constant dense<0xFF800000> : vector<8xf32>
    %86 = vector.multi_reduction <maximumf>, %85, %cst_34 [1] : vector<8x8xf32> to vector<8xf32>
    %87 = vector.shape_cast %86 : vector<8xf32> to vector<8x1xf32>
    %88 = vector.broadcast %87 : vector<8x1xf32> to vector<8x8xf32>
    %89 = arith.subf %85, %88 : vector<8x8xf32>
    %90 = math.exp %89 : vector<8x8xf32>
    %cst_35 = arith.constant dense<0.000000e+00> : vector<8xf32>
    %91 = vector.multi_reduction <add>, %90, %cst_35 [1] : vector<8x8xf32> to vector<8xf32>
    %92 = vector.shape_cast %91 : vector<8xf32> to vector<8x1xf32>
    %93 = tpu.reciprocal %92 {approx = true} : vector<8x1xf32> -> vector<8x1xf32>
    %94 = vector.broadcast %93 : vector<8x1xf32> to vector<8x8xf32>
    %95 = arith.mulf %90, %94 : vector<8x8xf32>
    %cst_36 = arith.constant dense<0.000000e+00> : vector<8x8xf32>
    %96 = tpu.matmul %95, %80, %cst_36 {dimension_numbers = #tpu.dot_dimension_numbers<[1], [0], [0], [1], [0, 0, 1, 1], [], []>} : vector<8x8xf32>, vector<8x8xf32>, vector<8x8xf32> -> vector<8x8xf32>
    %c24 = arith.constant 24 : index
    %c0_37 = arith.constant 0 : index
    %97 = vector.load %arg4[%c24, %c0_37] : memref<32x32xf32, #tpu.memory_space<vmem>>, vector<8x32xf32>
    %cst_38 = arith.constant dense<0.000000e+00> : vector<8x32xf32>
    %98 = tpu.matmul %96, %97, %cst_38 {dimension_numbers = #tpu.dot_dimension_numbers<[1], [0], [0], [1], [0, 0, 1, 1], [], []>} : vector<8x8xf32>, vector<8x32xf32>, vector<8x32xf32> -> vector<8x32xf32>
    %99 = arith.addf %77, %98 : vector<8x32xf32>
    %c0_39 = arith.constant 0 : index
    %c0_40 = arith.constant 0 : index
    %100 = vector.load %arg5[%c0_39, %c0_40] : memref<1x32xf32, #tpu.memory_space<vmem>>, vector<1x32xf32>
    %101 = vector.broadcast %100 : vector<1x32xf32> to vector<8x32xf32>
    %102 = arith.addf %99, %101 : vector<8x32xf32>
    %103 = arith.addf %1, %102 : vector<8x32xf32>
    %cst_41 = arith.constant dense<0.000000e+00> : vector<8xf32>
    %104 = vector.multi_reduction <add>, %103, %cst_41 [1] : vector<8x32xf32> to vector<8xf32>
    %105 = vector.shape_cast %104 : vector<8xf32> to vector<8x1xf32>
    %cst_42 = arith.constant 3.200000e+01 : f32
    %106 = vector.broadcast %cst_42 : f32 to vector<8x1xf32>
    %107 = arith.divf %105, %106 : vector<8x1xf32>
    %108 = vector.broadcast %107 : vector<8x1xf32> to vector<8x32xf32>
    %109 = arith.subf %103, %108 : vector<8x32xf32>
    %110 = arith.mulf %109, %109 : vector<8x32xf32>
    %cst_43 = arith.constant dense<0.000000e+00> : vector<8xf32>
    %111 = vector.multi_reduction <add>, %110, %cst_43 [1] : vector<8x32xf32> to vector<8xf32>
    %112 = vector.shape_cast %111 : vector<8xf32> to vector<8x1xf32>
    %cst_44 = arith.constant 3.200000e+01 : f32
    %113 = vector.broadcast %cst_44 : f32 to vector<8x1xf32>
    %114 = arith.divf %112, %113 : vector<8x1xf32>
    %cst_45 = arith.constant 9.99999974E-6 : f32
    %115 = vector.broadcast %cst_45 : f32 to vector<8x1xf32>
    %116 = arith.addf %114, %115 : vector<8x1xf32>
    %117 = math.rsqrt %116 : vector<8x1xf32>
    %118 = vector.broadcast %117 : vector<8x1xf32> to vector<8x32xf32>
    %119 = arith.mulf %109, %118 : vector<8x32xf32>
    %c0_46 = arith.constant 0 : index
    %c0_47 = arith.constant 0 : index
    %120 = vector.load %arg6[%c0_46, %c0_47] : memref<1x32xf32, #tpu.memory_space<vmem>>, vector<1x32xf32>
    %121 = vector.broadcast %120 : vector<1x32xf32> to vector<8x32xf32>
    %122 = arith.mulf %119, %121 : vector<8x32xf32>
    %c0_48 = arith.constant 0 : index
    %c0_49 = arith.constant 0 : index
    %123 = vector.load %arg7[%c0_48, %c0_49] : memref<1x32xf32, #tpu.memory_space<vmem>>, vector<1x32xf32>
    %124 = vector.broadcast %123 : vector<1x32xf32> to vector<8x32xf32>
    %125 = arith.addf %122, %124 : vector<8x32xf32>
    %c0_50 = arith.constant 0 : index
    %c0_51 = arith.constant 0 : index
    %c0_52 = arith.constant 0 : index
    %126 = vector.load %arg8[%c0_50, %c0_51, %c0_52] : memref<1x8x32xf32, #tpu.memory_space<vmem>>, vector<1x8x32xf32>
    %127 = vector.shape_cast %126 : vector<1x8x32xf32> to vector<8x32xf32>
    %128 = vector.shape_cast %125 : vector<8x32xf32> to vector<1x8x32xf32>
    tpu.vector_store %arg8[%c0_50, %c0_51, %c0_52], %128 {strides = array<i32>} : memref<1x8x32xf32, #tpu.memory_space<vmem>>, vector<1x8x32xf32>,
    return
  }
  func.func @transform_0(%arg0: i32) -> (i32, i32, i32) {
    %c0_i32 = arith.constant 0 : i32
    %c0_i32_0 = arith.constant 0 : i32
    %c0_i32_1 = arith.constant 0 : i32
    return %arg0, %c0_i32, %c0_i32_0 : i32, i32, i32
  }
  func.func @transform_1(%arg0: i32) -> (i32, i32) {
    %c0_i32 = arith.constant 0 : i32
    %c0_i32_0 = arith.constant 0 : i32
    %c0_i32_1 = arith.constant 0 : i32
    return %c0_i32, %c0_i32_0 : i32, i32
  }
  func.func @transform_2(%arg0: i32) -> (i32, i32) {
    %c0_i32 = arith.constant 0 : i32
    %c0_i32_0 = arith.constant 0 : i32
    %c0_i32_1 = arith.constant 0 : i32
    return %c0_i32, %c0_i32_0 : i32, i32
  }
  func.func @transform_3(%arg0: i32) -> (i32, i32) {
    %c0_i32 = arith.constant 0 : i32
    %c0_i32_0 = arith.constant 0 : i32
    %c0_i32_1 = arith.constant 0 : i32
    return %c0_i32, %c0_i32_0 : i32, i32
  }
  func.func @transform_4(%arg0: i32) -> (i32, i32) {
    %c0_i32 = arith.constant 0 : i32
    %c0_i32_0 = arith.constant 0 : i32
    %c0_i32_1 = arith.constant 0 : i32
    return %c0_i32, %c0_i32_0 : i32, i32
  }
  func.func @transform_5(%arg0: i32) -> (i32, i32) {
    %c0_i32 = arith.constant 0 : i32
    %c0_i32_0 = arith.constant 0 : i32
    %c0_i32_1 = arith.constant 0 : i32
    return %c0_i32, %c0_i32_0 : i32, i32
  }
  func.func @transform_6(%arg0: i32) -> (i32, i32) {
    %c0_i32 = arith.constant 0 : i32
    %c0_i32_0 = arith.constant 0 : i32
    %c0_i32_1 = arith.constant 0 : i32
    return %c0_i32, %c0_i32_0 : i32, i32
  }
  func.func @transform_7(%arg0: i32) -> (i32, i32, i32) {
    %c0_i32 = arith.constant 0 : i32
    %c0_i32_0 = arith.constant 0 : i32
    %c0_i32_1 = arith.constant 0 : i32
    return %arg0, %c0_i32, %c0_i32_0 : i32, i32, i32
  }
}

module attributes {stable_mosaic.version = 11 : i64} {
  func.func @_ffn_ln_kernel(%arg0: i32, %arg1: memref<8x32xf32, #tpu.memory_space<vmem>>, %arg2: memref<8x32xf32, #tpu.memory_space<vmem>>, %arg3: memref<32x64xf32, #tpu.memory_space<vmem>>, %arg4: memref<1x64xf32, #tpu.memory_space<vmem>>, %arg5: memref<64x32xf32, #tpu.memory_space<vmem>>, %arg6: memref<1x32xf32, #tpu.memory_space<vmem>>, %arg7: memref<1x32xf32, #tpu.memory_space<vmem>>, %arg8: memref<1x32xf32, #tpu.memory_space<vmem>>, %arg9: memref<8x32xf32, #tpu.memory_space<vmem>>) attributes {dimension_semantics = [#tpu.dimension_semantics<parallel>], iteration_bounds = array<i64: 2>, scalar_prefetch = 0 : i64, scratch_operands = 0 : i64, tpu.core_type = #tpu.core_type<tc>, window_params = [{transform_indices = @transform_0, window_bounds = array<i64: 8, 32>}, {transform_indices = @transform_1, window_bounds = array<i64: 8, 32>}, {pipeline_mode = #tpu.pipeline_mode<synchronous>, transform_indices = @transform_2, window_bounds = array<i64: 32, 64>}, {pipeline_mode = #tpu.pipeline_mode<synchronous>, transform_indices = @transform_3, window_bounds = array<i64: 1, 64>}, {pipeline_mode = #tpu.pipeline_mode<synchronous>, transform_indices = @transform_4, window_bounds = array<i64: 64, 32>}, {pipeline_mode = #tpu.pipeline_mode<synchronous>, transform_indices = @transform_5, window_bounds = array<i64: 1, 32>}, {pipeline_mode = #tpu.pipeline_mode<synchronous>, transform_indices = @transform_6, window_bounds = array<i64: 1, 32>}, {pipeline_mode = #tpu.pipeline_mode<synchronous>, transform_indices = @transform_7, window_bounds = array<i64: 1, 32>}, {transform_indices = @transform_8, window_bounds = array<i64: 8, 32>}]} {
    %c0 = arith.constant 0 : index
    %c0_0 = arith.constant 0 : index
    %0 = vector.load %arg1[%c0, %c0_0] : memref<8x32xf32, #tpu.memory_space<vmem>>, vector<8x32xf32>
    %c0_1 = arith.constant 0 : index
    %c0_2 = arith.constant 0 : index
    %1 = vector.load %arg3[%c0_1, %c0_2] : memref<32x64xf32, #tpu.memory_space<vmem>>, vector<32x64xf32>
    %cst = arith.constant dense<0.000000e+00> : vector<8x64xf32>
    %2 = tpu.matmul %0, %1, %cst {dimension_numbers = #tpu.dot_dimension_numbers<[1], [0], [0], [1], [0, 0, 1, 1], [], []>} : vector<8x32xf32>, vector<32x64xf32>, vector<8x64xf32> -> vector<8x64xf32>
    %c0_3 = arith.constant 0 : index
    %c0_4 = arith.constant 0 : index
    %3 = vector.load %arg4[%c0_3, %c0_4] : memref<1x64xf32, #tpu.memory_space<vmem>>, vector<1x64xf32>
    %4 = vector.broadcast %3 : vector<1x64xf32> to vector<8x64xf32>
    %5 = arith.addf %2, %4 : vector<8x64xf32>
    %cst_5 = arith.constant 0.000000e+00 : f32
    %6 = vector.broadcast %cst_5 : f32 to vector<8x64xf32>
    %7 = arith.maximumf %5, %6 : vector<8x64xf32>
    %c0_6 = arith.constant 0 : index
    %c0_7 = arith.constant 0 : index
    %8 = vector.load %arg5[%c0_6, %c0_7] : memref<64x32xf32, #tpu.memory_space<vmem>>, vector<64x32xf32>
    %cst_8 = arith.constant dense<0.000000e+00> : vector<8x32xf32>
    %9 = tpu.matmul %7, %8, %cst_8 {dimension_numbers = #tpu.dot_dimension_numbers<[1], [0], [0], [1], [0, 0, 1, 1], [], []>} : vector<8x64xf32>, vector<64x32xf32>, vector<8x32xf32> -> vector<8x32xf32>
    %c0_9 = arith.constant 0 : index
    %c0_10 = arith.constant 0 : index
    %10 = vector.load %arg6[%c0_9, %c0_10] : memref<1x32xf32, #tpu.memory_space<vmem>>, vector<1x32xf32>
    %11 = vector.broadcast %10 : vector<1x32xf32> to vector<8x32xf32>
    %12 = arith.addf %9, %11 : vector<8x32xf32>
    %13 = arith.addf %0, %12 : vector<8x32xf32>
    %cst_11 = arith.constant dense<0.000000e+00> : vector<8xf32>
    %14 = vector.multi_reduction <add>, %13, %cst_11 [1] : vector<8x32xf32> to vector<8xf32>
    %15 = vector.shape_cast %14 : vector<8xf32> to vector<8x1xf32>
    %cst_12 = arith.constant 3.200000e+01 : f32
    %16 = vector.broadcast %cst_12 : f32 to vector<8x1xf32>
    %17 = arith.divf %15, %16 : vector<8x1xf32>
    %18 = vector.broadcast %17 : vector<8x1xf32> to vector<8x32xf32>
    %19 = arith.subf %13, %18 : vector<8x32xf32>
    %20 = arith.mulf %19, %19 : vector<8x32xf32>
    %cst_13 = arith.constant dense<0.000000e+00> : vector<8xf32>
    %21 = vector.multi_reduction <add>, %20, %cst_13 [1] : vector<8x32xf32> to vector<8xf32>
    %22 = vector.shape_cast %21 : vector<8xf32> to vector<8x1xf32>
    %cst_14 = arith.constant 3.200000e+01 : f32
    %23 = vector.broadcast %cst_14 : f32 to vector<8x1xf32>
    %24 = arith.divf %22, %23 : vector<8x1xf32>
    %cst_15 = arith.constant 9.99999974E-6 : f32
    %25 = vector.broadcast %cst_15 : f32 to vector<8x1xf32>
    %26 = arith.addf %24, %25 : vector<8x1xf32>
    %27 = math.rsqrt %26 : vector<8x1xf32>
    %28 = vector.broadcast %27 : vector<8x1xf32> to vector<8x32xf32>
    %29 = arith.mulf %19, %28 : vector<8x32xf32>
    %c0_16 = arith.constant 0 : index
    %c0_17 = arith.constant 0 : index
    %30 = vector.load %arg7[%c0_16, %c0_17] : memref<1x32xf32, #tpu.memory_space<vmem>>, vector<1x32xf32>
    %31 = vector.broadcast %30 : vector<1x32xf32> to vector<8x32xf32>
    %32 = arith.mulf %29, %31 : vector<8x32xf32>
    %c0_18 = arith.constant 0 : index
    %c0_19 = arith.constant 0 : index
    %33 = vector.load %arg8[%c0_18, %c0_19] : memref<1x32xf32, #tpu.memory_space<vmem>>, vector<1x32xf32>
    %34 = vector.broadcast %33 : vector<1x32xf32> to vector<8x32xf32>
    %35 = arith.addf %32, %34 : vector<8x32xf32>
    %c0_20 = arith.constant 0 : index
    %c0_21 = arith.constant 0 : index
    %36 = vector.load %arg2[%c0_20, %c0_21] : memref<8x32xf32, #tpu.memory_space<vmem>>, vector<8x32xf32>
    %37 = arith.addf %35, %36 : vector<8x32xf32>
    %c0_22 = arith.constant 0 : index
    %c0_23 = arith.constant 0 : index
    %38 = vector.load %arg9[%c0_22, %c0_23] : memref<8x32xf32, #tpu.memory_space<vmem>>, vector<8x32xf32>
    tpu.vector_store %arg9[%c0_22, %c0_23], %37 {strides = array<i32>} : memref<8x32xf32, #tpu.memory_space<vmem>>, vector<8x32xf32>,
    return
  }
  func.func @transform_0(%arg0: i32) -> (i32, i32) {
    %c0_i32 = arith.constant 0 : i32
    %c0_i32_0 = arith.constant 0 : i32
    return %arg0, %c0_i32 : i32, i32
  }
  func.func @transform_1(%arg0: i32) -> (i32, i32) {
    %c0_i32 = arith.constant 0 : i32
    %c0_i32_0 = arith.constant 0 : i32
    return %arg0, %c0_i32 : i32, i32
  }
  func.func @transform_2(%arg0: i32) -> (i32, i32) {
    %c0_i32 = arith.constant 0 : i32
    %c0_i32_0 = arith.constant 0 : i32
    %c0_i32_1 = arith.constant 0 : i32
    return %c0_i32, %c0_i32_0 : i32, i32
  }
  func.func @transform_3(%arg0: i32) -> (i32, i32) {
    %c0_i32 = arith.constant 0 : i32
    %c0_i32_0 = arith.constant 0 : i32
    %c0_i32_1 = arith.constant 0 : i32
    return %c0_i32, %c0_i32_0 : i32, i32
  }
  func.func @transform_4(%arg0: i32) -> (i32, i32) {
    %c0_i32 = arith.constant 0 : i32
    %c0_i32_0 = arith.constant 0 : i32
    %c0_i32_1 = arith.constant 0 : i32
    return %c0_i32, %c0_i32_0 : i32, i32
  }
  func.func @transform_5(%arg0: i32) -> (i32, i32) {
    %c0_i32 = arith.constant 0 : i32
    %c0_i32_0 = arith.constant 0 : i32
    %c0_i32_1 = arith.constant 0 : i32
    return %c0_i32, %c0_i32_0 : i32, i32
  }
  func.func @transform_6(%arg0: i32) -> (i32, i32) {
    %c0_i32 = arith.constant 0 : i32
    %c0_i32_0 = arith.constant 0 : i32
    %c0_i32_1 = arith.constant 0 : i32
    return %c0_i32, %c0_i32_0 : i32, i32
  }
  func.func @transform_7(%arg0: i32) -> (i32, i32) {
    %c0_i32 = arith.constant 0 : i32
    %c0_i32_0 = arith.constant 0 : i32
    %c0_i32_1 = arith.constant 0 : i32
    return %c0_i32, %c0_i32_0 : i32, i32
  }
  func.func @transform_8(%arg0: i32) -> (i32, i32) {
    %c0_i32 = arith.constant 0 : i32
    %c0_i32_0 = arith.constant 0 : i32
    return %arg0, %c0_i32 : i32, i32
  }
}

module attributes {stable_mosaic.version = 11 : i64} {
  func.func @_ln_kernel(%arg0: i32, %arg1: memref<8x32xf32, #tpu.memory_space<vmem>>, %arg2: memref<1x32xf32, #tpu.memory_space<vmem>>, %arg3: memref<1x32xf32, #tpu.memory_space<vmem>>, %arg4: memref<8x32xf32, #tpu.memory_space<vmem>>) attributes {dimension_semantics = [#tpu.dimension_semantics<parallel>], iteration_bounds = array<i64: 2>, scalar_prefetch = 0 : i64, scratch_operands = 0 : i64, tpu.core_type = #tpu.core_type<tc>, window_params = [{transform_indices = @transform_0, window_bounds = array<i64: 8, 32>}, {pipeline_mode = #tpu.pipeline_mode<synchronous>, transform_indices = @transform_1, window_bounds = array<i64: 1, 32>}, {pipeline_mode = #tpu.pipeline_mode<synchronous>, transform_indices = @transform_2, window_bounds = array<i64: 1, 32>}, {transform_indices = @transform_3, window_bounds = array<i64: 8, 32>}]} {
    %c0 = arith.constant 0 : index
    %c0_0 = arith.constant 0 : index
    %0 = vector.load %arg1[%c0, %c0_0] : memref<8x32xf32, #tpu.memory_space<vmem>>, vector<8x32xf32>
    %cst = arith.constant dense<0.000000e+00> : vector<8xf32>
    %1 = vector.multi_reduction <add>, %0, %cst [1] : vector<8x32xf32> to vector<8xf32>
    %2 = vector.shape_cast %1 : vector<8xf32> to vector<8x1xf32>
    %cst_1 = arith.constant 3.200000e+01 : f32
    %3 = vector.broadcast %cst_1 : f32 to vector<8x1xf32>
    %4 = arith.divf %2, %3 : vector<8x1xf32>
    %5 = vector.broadcast %4 : vector<8x1xf32> to vector<8x32xf32>
    %6 = arith.subf %0, %5 : vector<8x32xf32>
    %7 = arith.mulf %6, %6 : vector<8x32xf32>
    %cst_2 = arith.constant dense<0.000000e+00> : vector<8xf32>
    %8 = vector.multi_reduction <add>, %7, %cst_2 [1] : vector<8x32xf32> to vector<8xf32>
    %9 = vector.shape_cast %8 : vector<8xf32> to vector<8x1xf32>
    %cst_3 = arith.constant 3.200000e+01 : f32
    %10 = vector.broadcast %cst_3 : f32 to vector<8x1xf32>
    %11 = arith.divf %9, %10 : vector<8x1xf32>
    %cst_4 = arith.constant 9.99999974E-6 : f32
    %12 = vector.broadcast %cst_4 : f32 to vector<8x1xf32>
    %13 = arith.addf %11, %12 : vector<8x1xf32>
    %14 = math.rsqrt %13 : vector<8x1xf32>
    %15 = vector.broadcast %14 : vector<8x1xf32> to vector<8x32xf32>
    %16 = arith.mulf %6, %15 : vector<8x32xf32>
    %c0_5 = arith.constant 0 : index
    %c0_6 = arith.constant 0 : index
    %17 = vector.load %arg2[%c0_5, %c0_6] : memref<1x32xf32, #tpu.memory_space<vmem>>, vector<1x32xf32>
    %18 = vector.broadcast %17 : vector<1x32xf32> to vector<8x32xf32>
    %19 = arith.mulf %16, %18 : vector<8x32xf32>
    %c0_7 = arith.constant 0 : index
    %c0_8 = arith.constant 0 : index
    %20 = vector.load %arg3[%c0_7, %c0_8] : memref<1x32xf32, #tpu.memory_space<vmem>>, vector<1x32xf32>
    %21 = vector.broadcast %20 : vector<1x32xf32> to vector<8x32xf32>
    %22 = arith.addf %19, %21 : vector<8x32xf32>
    %c0_9 = arith.constant 0 : index
    %c0_10 = arith.constant 0 : index
    %23 = vector.load %arg4[%c0_9, %c0_10] : memref<8x32xf32, #tpu.memory_space<vmem>>, vector<8x32xf32>
    tpu.vector_store %arg4[%c0_9, %c0_10], %22 {strides = array<i32>} : memref<8x32xf32, #tpu.memory_space<vmem>>, vector<8x32xf32>,
    return
  }
  func.func @transform_0(%arg0: i32) -> (i32, i32) {
    %c0_i32 = arith.constant 0 : i32
    %c0_i32_0 = arith.constant 0 : i32
    return %arg0, %c0_i32 : i32, i32
  }
  func.func @transform_1(%arg0: i32) -> (i32, i32) {
    %c0_i32 = arith.constant 0 : i32
    %c0_i32_0 = arith.constant 0 : i32
    %c0_i32_1 = arith.constant 0 : i32
    return %c0_i32, %c0_i32_0 : i32, i32
  }
  func.func @transform_2(%arg0: i32) -> (i32, i32) {
    %c0_i32 = arith.constant 0 : i32
    %c0_i32_0 = arith.constant 0 : i32
    %c0_i32_1 = arith.constant 0 : i32
    return %c0_i32, %c0_i32_0 : i32, i32
  }
  func.func @transform_3(%arg0: i32) -> (i32, i32) {
    %c0_i32 = arith.constant 0 : i32
    %c0_i32_0 = arith.constant 0 : i32
    return %arg0, %c0_i32 : i32, i32
  }
}

</mosaic_0001>

<bundles_post_ra>
// kernel: graformer_decoder.9
= control target key start
LH: loop header
LB: loop body
LE: loop exit
PB: predicated region body
PF: predicated region fallthrough
CT: control target
= control target key end

     0   :  { %s740_s27 = smov 0   ;;  %s817_s0 = inlined_call_operand.vmem [shape: f32[16,32], index: 0, kind: input, shape index: {}]   ;;  %s818_s1 = inlined_call_operand.vmem [shape: f32[16,32], index: 1, kind: input, shape index: {}]   ;;  %s819_s2 = inlined_call_operand.vmem [shape: f32[32,64], index: 2, kind: input, shape index: {}]   ;;  %s820_s3 = inlined_call_operand.vmem [shape: f32[1,64], index: 3, kind: input, shape index: {}]   ;;  %s821_s4 = inlined_call_operand.vmem [shape: f32[64,32], index: 4, kind: input, shape index: {}]   ;;  %s822_s5 = inlined_call_operand.vmem [shape: f32[1,32], index: 5, kind: input, shape index: {}]   ;;  %s823_s6 = inlined_call_operand.vmem [shape: f32[1,32], index: 6, kind: input, shape index: {}]   ;;  %s824_s7 = inlined_call_operand.vmem [shape: f32[1,32], index: 7, kind: input, shape index: {}]   ;;  %s825_s8 = inlined_call_operand.vmem [shape: f32[16,32], index: 8, kind: output, shape index: {}]  }
   0x1 LB: > { %s593_s28 = sadd.s32 4294967295, %s690_s27   ;;  %p597_p0 = scmp.ge.s32.totalorder %s690_s27, 1  ;;  %s690_s27 = sphi %s740_s27, %s18_s27  }
   0x2   : > { %p270_p1 = scmp.lt.s32.totalorder %s690_s27, 3 }
   0x4   : > { %p271_p2 = pnand %p597_p0, %p270_p1 }
   0x5   : > { %v319_v0 = vld [vmem:[%s819_s2] sm:$0xff] (!%p271_p2)  ;;  %v320_v1 = vld [vmem:[%s819_s2 + $0x8] sm:$0xff] (!%p271_p2)  ;;  %v321_v2 = vld [vmem:[%s819_s2 + $0x10] sm:$0xff] (!%p271_p2)  ;;  %v692_v3 = vmov (!%p271_p2), 0.0|0.0   ;;  %vm693_vm0 = vmmov (!%p271_p2), 0   ;;  %v694_v6 = vmov (!%p271_p2), 0.0  }
   0x6   : > { %274 = sbr.rel (%p271_p2) target bundleno = 765 (0x2fd), region = 52  ;;  %653 = vmatprep.subr.bf16.mxu0 (!%p271_p2), %v692_v3  ;;  %v654_v4 = vpack.c.bf16 (!%p271_p2), %v320_v1, %v319_v0  ;;  %v322_v5 = vld [vmem:[%s819_s2 + $0x18] sm:$0xff] (!%p271_p2)  ;;  %631 = vmatprep.mubr.msk.f32.mxu0 (!%p271_p2), %vm693_vm0, %v694_v6  ;;  %p306_p3 = scmp.lt.s32.totalorder (!%p271_p2), %s593_s28, 1  ;;  %v405_v7 = vld [vmem:[%s821_s4] sm:$0xff] (!%p271_p2)  ;;  %v406_v8 = vld [vmem:[%s821_s4 + $0x8] sm:$0xff] (!%p271_p2)  ;;  %vm330_vm1 = vcmask (!%p271_p2), 261120  }
   0x7   : > { %659 = vmatprep.subr.bf16.mxu1 (!%p271_p2), %v692_v3  ;;  %v660_v9 = vpack.c.bf16 (!%p271_p2), %v406_v8, %v405_v7  ;;  %v407_v10 = vld [vmem:[%s821_s4 + $0x10] sm:$0xff] (!%p271_p2)  ;;  %v408_v11 = vld [vmem:[%s821_s4 + $0x18] sm:$0xff] (!%p271_p2)  ;;  %650 = vmatprep.mubr.msk.f32.mxu1 (!%p271_p2), %vm693_vm0, %v694_v6  ;;  %v657_v12 = vpack.c.bf16 (!%p271_p2), %v322_v5, %v321_v2  ;;  %v409_v14 = vld [vmem:[%s821_s4 + $0x20] sm:$0xff] (!%p271_p2)  ;;  %vm420_vm2 = vcmask (!%p271_p2), 523264  }
   0x8   : > { %655 = vmatpush3.bf16.msra.mxu0 (!%p271_p2), %v654_v4  ;;  %v663_v13 = vpack.c.bf16 (!%p271_p2), %v408_v11, %v407_v10  ;;  %v410_v15 = vld [vmem:[%s821_s4 + $0x28] sm:$0xff] (!%p271_p2)  ;;  %v411_v18 = vld [vmem:[%s821_s4 + $0x30] sm:$0xff] (!%p271_p2)  ;;  %v412_v19 = vld [vmem:[%s821_s4 + $0x38] sm:$0xff] (!%p271_p2) }
   0x9   : > { %656 = vmatprep.subr.bf16.mxu0 (!%p271_p2), %v692_v3  ;;  %661 = vmatpush3.bf16.msra.mxu1 (!%p271_p2), %v660_v9  ;;  %v666_v17 = vpack.c.bf16 (!%p271_p2), %v410_v15, %v409_v14  ;;  %v669_v20 = vpack.c.bf16 (!%p271_p2), %v412_v19, %v411_v18  ;;  %v601_v21 = vld [vmem:[%s820_s3] ss:$0 sm:$0xff] (!%p271_p2) }
   0xa   : > { %662 = vmatprep.subr.bf16.mxu1 (!%p271_p2), %v692_v3  ;;  %v603_v26 = vld [vmem:[%s822_s5] ss:$0 sm:$0xff] (!%p271_p2) }
   0xb   : > { %v605_v41 = vld [vmem:[%s823_s6] ss:$0 sm:$0xff] (!%p271_p2) }
   0xc   : > { %658 = vmatpush3.bf16.msra.mxu0 (!%p271_p2), %v657_v12  ;;  %v606_v43 = vld [vmem:[%s824_s7] ss:$0 sm:$0xff] (!%p271_p2) }
   0xd   : > { %s827_s28 = smov (!%p306_p3, %s593_s28), 1  ;;  %664 = vmatpush3.bf16.msra.mxu1 %v663_v13 }
   0xe   : > { %s772_s23 = sshll.u32 %s827_s28, 3  ;;  %665 = vmatprep.subr.bf16.mxu1 %v692_v3 }
   0xf   : > { %s309_s10 = scalar_lea.vmem %s817_s0, %s772_s23  ;;  %s313_s22 = scalar_lea.vmem %s818_s1, %s772_s23 }
  0x10   : > { %v318_v16 = vld [vmem:[%s309_s10] sm:$0xff]  ;;  %s317_s30 = scalar_lea.vmem %s825_s8, %s772_s23 }
  0x11   : > { %632 = vmatmul.mubr.msk.f32.vlgmr.msra.gmra.mrb[0].mxu0 %vm330_vm1, %v318_v16  ;;  %667 = vmatpush3.bf16.msra.mxu1 %v666_v17  ;;  %v525_v45 = vld [vmem:[%s313_s22] sm:$0xff] }
  0x12   : > { %668 = vmatprep.subr.bf16.mxu1 %v692_v3 }
  0x15   : > { %670 = vmatpush3.bf16.msra.mxu1 %v669_v20 }
  0xe4   : > { %v400_v22 = vpop.f32.mrb[0].mxu0 }
  0xe5   : > { %v401_v23 = vadd.f32 %v601_v21, %v400_v22  ;;  %v633_v24 = vpop.f32.mrb[1].mxu0 }
  0xe7   : > { %v404_v25 = vmax.f32 %v401_v23, 0.0 }
  0xe9   : > { %651 = vmatmul.mubr.msk.f32.vlgmr.msra.gmra.mrb[0].mxu1 %vm420_vm2, %v404_v25 }
 0x1bc   : > { %v490_v27 = vpop.f32.mrb[0].mxu1 }
 0x1bd   : > { %v491_v28 = vadd.f32 %v603_v26, %v490_v27  ;;  %v652_v29 = vpop.f32.mrb[1].mxu1 }
 0x1bf   : > { %v494_v30 = vadd.f32 %v491_v28, %v318_v16 }
 0x1c1   : > { %v495_v31 = vsel %vm330_vm1, %v494_v30, 0.0 }
 0x1c2   : > { %496 = vadd.xlane.f32.xlu0 %v495_v31 }
 0x24f   : > { %v497_v32 = vpop.xlane.xlu0 %496 }
 0x250   : > { %v499_v33 = vmul.f32 0.03125, %v497_v32 }
 0x252   : > { %v500_v34 = vsub.f32 %v494_v30, %v499_v33 }
 0x254   : > { %v501_v35 = vmul.f32 %v500_v34, %v500_v34 }
 0x256   : > { %v502_v36 = vsel %vm330_vm1, %v501_v35, 0.0 }
 0x257   : > { %503 = vadd.xlane.f32.xlu0 %v502_v36 }
 0x2e4   : > { %v504_v37 = vpop.xlane.xlu0 %503 }
 0x2e5   : > { %v505_v38 = vmul.f32 0.03125, %v504_v37 }
 0x2e7   : > { %v506_v39 = vadd.f32 1e-05, %v505_v38 }
 0x2e9   : > { %682 = vrsqrt.f32 %v506_v39 }
 0x2f3   : > { %v683_v40 = vpop.eup %682 }
 0x2f4   : > { %v508_v42 = vmul.f32 %v683_v40, %v500_v34 }
 0x2f6   : > { %v516_v44 = vmul.f32 %v605_v41, %v508_v42 }
 0x2f8   : > { %v524_v46 = vadd.f32 %v606_v43, %v516_v44 }
 0x2fa   : > { %v526_v47 = vadd.f32 %v525_v45, %v524_v46 }
 0x2fc   : > { %527 = vst.msk [vmem:[%s317_s30] sm:$0xff] %vm330_vm1, %v526_v47 }
 0x2fd PF: > { %s18_s27 = sadd.s32 1, %s690_s27  }
 0x2fe   : > { %p15_p4 = scmp.ge.s32.totalorder %s18_s27, 4  }
 0x300   :  { %17 = sbr.rel (!%p15_p4) target bundleno = 1 (0x1), region = 85 }

// kernel: graformer_decoder.13
= control target key start
LH: loop header
LB: loop body
LE: loop exit
PB: predicated region body
PF: predicated region fallthrough
CT: control target
= control target key end

     0   :  { %s301_s12 = smov 0   ;;  %s327_s0 = inlined_call_operand.vmem [shape: f32[16,32], index: 0, kind: input, shape index: {}]   ;;  %s328_s1 = inlined_call_operand.vmem [shape: f32[1,32], index: 1, kind: input, shape index: {}]   ;;  %s329_s2 = inlined_call_operand.vmem [shape: f32[1,32], index: 2, kind: input, shape index: {}]   ;;  %s330_s3 = inlined_call_operand.vmem [shape: f32[16,32], index: 3, kind: output, shape index: {}]  }
   0x1 LB: > { %s252_s13 = sadd.s32 4294967295, %s279_s12   ;;  %p256_p0 = scmp.ge.s32.totalorder %s279_s12, 1  ;;  %s279_s12 = sphi %s301_s12, %s13_s12  }
   0x2   : > { %p136_p1 = scmp.lt.s32.totalorder %s279_s12, 3 }
   0x4   : > { %p137_p2 = pnand %p256_p0, %p136_p1 }
   0x5   : > { %p158_p3 = scmp.lt.s32.totalorder (!%p137_p2), %s252_s13, 1  ;;  %vm167_vm0 = vcmask (!%p137_p2), 261120   ;;  %v259_v11 = vld [vmem:[%s328_s1] ss:$0 sm:$0xff] (!%p137_p2) }
   0x6   : > { %140 = sbr.rel (%p137_p2) target bundleno = 331 (0x14b), region = 32  ;;  %v260_v13 = vld [vmem:[%s329_s2] ss:$0 sm:$0xff] (!%p137_p2) }
   0xd   : > { %s332_s13 = smov (!%p158_p3, %s252_s13), 1 }
   0xe   : > { %s257_s14 = sshll.u32 %s332_s13, 3 }
   0xf   : > { %s161_s17 = scalar_lea.vmem %s327_s0, %s257_s14  ;;  %s165_s24 = scalar_lea.vmem %s330_s3, %s257_s14 }
  0x10   : > { %v166_v0 = vld [vmem:[%s161_s17] sm:$0xff] }
  0x11   : > { %v168_v1 = vsel %vm167_vm0, %v166_v0, 0.0 }
  0x12   : > { %169 = vadd.xlane.f32.xlu0 %v168_v1 }
  0x9f   : > { %v170_v2 = vpop.xlane.xlu0 %169 }
  0xa0   : > { %v172_v3 = vmul.f32 0.03125, %v170_v2 }
  0xa2   : > { %v173_v4 = vsub.f32 %v166_v0, %v172_v3 }
  0xa4   : > { %v174_v5 = vmul.f32 %v173_v4, %v173_v4 }
  0xa6   : > { %v175_v6 = vsel %vm167_vm0, %v174_v5, 0.0 }
  0xa7   : > { %176 = vadd.xlane.f32.xlu0 %v175_v6 }
 0x134   : > { %v177_v7 = vpop.xlane.xlu0 %176 }
 0x135   : > { %v178_v8 = vmul.f32 0.03125, %v177_v7 }
 0x137   : > { %v179_v9 = vadd.f32 1e-05, %v178_v8 }
 0x139   : > { %271 = vrsqrt.f32 %v179_v9 }
 0x143   : > { %v272_v10 = vpop.eup %271 }
 0x144   : > { %v181_v12 = vmul.f32 %v272_v10, %v173_v4 }
 0x146   : > { %v189_v14 = vmul.f32 %v259_v11, %v181_v12 }
 0x148   : > { %v197_v15 = vadd.f32 %v260_v13, %v189_v14 }
 0x14a   : > { %198 = vst.msk [vmem:[%s165_s24] sm:$0xff] %vm167_vm0, %v197_v15 }
 0x14b PF: > { %s13_s12 = sadd.s32 1, %s279_s12  }
 0x14c   : > { %p10_p4 = scmp.ge.s32.totalorder %s13_s12, 4  }
 0x14e   :  { %12 = sbr.rel (!%p10_p4) target bundleno = 1 (0x1), region = 62 }

// kernel: graformer_decoder.8
= control target key start
LH: loop header
LB: loop body
LE: loop exit
PB: predicated region body
PF: predicated region fallthrough
CT: control target
= control target key end

     0   :  { %s1969_s27 = smov 0   ;;  %s2133_s0 = inlined_call_operand.vmem [shape: f32[2,8,32], index: 0, kind: input, shape index: {}]   ;;  %s2134_s1 = inlined_call_operand.vmem [shape: f32[2,16,32], index: 1, kind: input, shape index: {}]   ;;  %s2135_s2 = inlined_call_operand.vmem [shape: f32[32,96], index: 2, kind: input, shape index: {}]   ;;  %s2136_s3 = inlined_call_operand.vmem [shape: f32[1,96], index: 3, kind: input, shape index: {}]   ;;  %s2137_s4 = inlined_call_operand.vmem [shape: f32[32,32], index: 4, kind: input, shape index: {}]   ;;  %s2138_s5 = inlined_call_operand.vmem [shape: f32[1,32], index: 5, kind: input, shape index: {}]   ;;  %s2139_s6 = inlined_call_operand.vmem [shape: f32[1,32], index: 6, kind: input, shape index: {}]   ;;  %s2140_s7 = inlined_call_operand.vmem [shape: f32[1,32], index: 7, kind: input, shape index: {}]   ;;  %s2141_s8 = inlined_call_operand.vmem [shape: f32[2,8,32], index: 8, kind: output, shape index: {}]  }
   0x1 LB: > { %s1603_s28 = sadd.s32 4294967295, %s1912_s27   ;;  %p1607_p0 = scmp.ge.s32.totalorder %s1912_s27, 1  ;;  %s1912_s27 = sphi %s1969_s27, %s18_s27  }
   0x2   : > { %p271_p1 = scmp.lt.s32.totalorder %s1912_s27, 3 }
   0x4   : > { %p272_p2 = pnand %p1607_p0, %p271_p1 }
   0x5   : > { %v324_v0 = vld [vmem:[%s2135_s2] sm:$0xff] (!%p272_p2)  ;;  %v325_v1 = vld [vmem:[%s2135_s2 + $0x8] sm:$0xff] (!%p272_p2)  ;;  %v326_v2 = vld [vmem:[%s2135_s2 + $0x10] sm:$0xff] (!%p272_p2)  ;;  %p308_p3 = scmp.lt.s32.totalorder (!%p272_p2), %s1603_s28, 1  ;;  %s1914_s17 = smov (!%p272_p2), 96   ;;  %v1915_v8 = vmov (!%p272_p2), 0.0|0.0  }
   0x6   : > { %275 = sbr.rel (%p272_p2) target bundleno = 3134 (0xc3e), region = 52  ;;  %v1843_v3 = vpack.i.bf16 (!%p272_p2), %v325_v1, %v324_v0  ;;  %v327_v4 = vld [vmem:[%s2135_s2 + $0x18] sm:$0xff] (!%p272_p2)  ;;  %v1784_v5 = vpack.c.bf16 (!%p272_p2), %v325_v1, %v324_v0  ;;  %v1612_v6 = vld [vmem:[%s2136_s3] ss:$0 sm:$0xff] (!%p272_p2)  ;;  %1783 = vmatprep.subr.bf16.mxu0 (!%p272_p2), %v1915_v8  ;;  %vm335_vm0 = vcmask (!%p272_p2), 261120   ;;  %vm1916_vm1 = vmmov (!%p272_p2), 0  }
   0x7   : > { %v1848_v7 = vpack.i.bf16 (!%p272_p2), %v327_v4, %v326_v2  ;;  %v1787_v9 = vpack.c.bf16 (!%p272_p2), %v327_v4, %v326_v2  ;;  %v1917_v10 = vmov (!%p272_p2), 0.0   ;;  %425 = vrot.lane.b32.xlu1 (!%p272_p2), %v1612_v6, %s1914_s17  ;;  %vm509_vm2 = vcmask (!%p272_p2), 64512   ;;  %s1918_s26 = smov (!%p272_p2), 120   ;;  %v681_v54 = vld [vmem:[%s2137_s4] sm:$0xff] (!%p272_p2)  ;;  %s1919_s9 = smov (!%p272_p2), 88  }
   0x8   : > { %1844 = vrot.lane.b32.xlu0 (!%p272_p2), %v1843_v3, %s1914_s17  ;;  %1785 = vmatpush3.bf16.msra.mxu0 (!%p272_p2), %v1784_v5  ;;  %vm2025_vm3 = vmpackc.low (!%p272_p2), %vm509_vm2, %vm509_vm2  ;;  %vm590_vm4 = vcmask (!%p272_p2), 130048   ;;  %s1920_s10 = smov (!%p272_p2), 112   ;;  %s1921_s11 = smov (!%p272_p2), 104  }
   0x9   : > { %1693 = vmatprep.mubr.msk.f32.mxu0 (!%p272_p2), %vm1916_vm1, %v1917_v10  ;;  %1786 = vmatprep.subr.bf16.mxu0 (!%p272_p2), %v1915_v8  ;;  %s1922_s14 = smov (!%p272_p2), 80   ;;  %s1923_s15 = smov (!%p272_p2), 72  }
   0xc   : > { %1849 = vrot.lane.b32.xlu0 (!%p272_p2), %v1848_v7, %s1914_s17  ;;  %1788 = vmatpush3.bf16.msra.mxu0 (!%p272_p2), %v1787_v9 }
   0xd   : > { %s2145_s28 = smov (!%p308_p3, %s1603_s28), 1  ;;  %1797 = vmatprep.subr.bf16.mxu0 %v1915_v8 }
   0xe   : > { %s1641_s18 = sshll.u32 %s2145_s28, 4  ;;  %s1608_s19 = sshll.u32 %s2145_s28, 3 }
   0xf   : > { %s316_s22 = scalar_lea.vmem %s2134_s1, %s1641_s18  ;;  %s311_s25 = scalar_lea.vmem %s2133_s0, %s1608_s19 }
  0x10   : > { %v322_v11 = vld [vmem:[%s316_s22] sm:$0xff]  ;;  %v323_v21 = vld [vmem:[%s316_s22 + $0x8] sm:$0xff] }
  0x11   : > { %1704 = vmatprep.mubr.msk.f32.mxu1 %vm335_vm0, %v322_v11  ;;  %v2012_v12 = vld [vmem:[%s311_s25] sm:$0xff] }
  0x12   : > { %1694 = vmatmul.mubr.msk.f32.vlgmr.msra.gmra.mrb[0].mxu0 %vm335_vm0, %v2012_v12 }
  0x13   : > { %1711 = vmatprep.mubr.msk.f32.mxu0 %vm1916_vm1, %v1917_v10 }
  0x79   : > { %v426_v24 = vpop.permute.xlu1 %425 }
  0x7a   : > { %v1845_v13 = vpop.permute.xlu0 %1844 }
  0x7b   : > { %v1847_v14 = vunpack.i.h.bf16 %v1845_v13  ;;  %v1846_v15 = vunpack.i.l.bf16 %v1845_v13 }
  0x7d   : > { %v1789_v16 = vpack.c.bf16 %v1847_v14, %v1846_v15  ;;  %v855_v14 = vld [vmem:[%s2137_s4 + $0x8] sm:$0xff] }
  0x7e   : > { %v1850_v17 = vpop.permute.xlu0 %1849 }
  0x7f   : > { %v1852_v18 = vunpack.i.h.bf16 %v1850_v17  ;;  %v1851_v19 = vunpack.i.l.bf16 %v1850_v17  ;;  %1790 = vmatprep.subr.bf16.mxu1 %v1789_v16 }
  0x80   : > { %1792 = vmatpush3.bf16.msra.mxu1 %v1789_v16 }
  0x81   : > { %v1793_v20 = vpack.c.bf16 %v1852_v18, %v1851_v19 }
  0x83   : > { %1794 = vmatprep.subr.bf16.mxu1 %v1793_v20 }
  0x84   : > { %1796 = vmatpush3.bf16.msra.mxu1 %v1793_v20 }
  0x85   : > { %1801 = vmatprep.subr.bf16.mxu1 %v1915_v8 }
  0x87   : > { %1705 = vmatmul.mubr.msk.f32.vlgmr.msra.gmra.mrb[0].mxu1 %vm335_vm0, %v323_v21 }
  0x88   : > { %1718 = vmatprep.mubr.msk.f32.mxu1 %vm1916_vm1, %v1917_v10 }
  0xe5   : > { %v405_v22 = vpop.f32.mrb[0].mxu0 }
  0xe6   : > { %v1695_v23 = vpop.f32.mrb[1].mxu0  ;;  %v406_v32 = vadd.f32 %v1612_v6, %v405_v22 }
 0x15a   : > { %v1706_v25 = vpop.f32.mrb[0].mxu1 }
 0x15b   : > { %v506_v26 = vadd.f32 %v1706_v25, %v426_v24  ;;  %v500_v27 = vpop.f32.mrb[1].mxu1 }
 0x15c   : > { %v501_v28 = vadd.f32 %v500_v27, %v426_v24 }
 0x15e   : > { %v1798_v30 = vpack.c.bf16 %v506_v26, %v501_v28  ;;  %v2029_v31 = vpack.i.bf16 %v506_v26, %v501_v28 }
 0x160   : > { %1800 = vmatpush3.bf16.xpose.msk.msra.mxu0 %vm2025_vm3, %v1798_v30 }
 0x161   : > { %1808 = vmatprep.subr.bf16.mxu0 %v1915_v8 }
 0x167   : > { %1712 = vmatmul.mubr.msk.f32.vlgmr.msra.gmra.mrb[2].mxu0 %vm509_vm2, %v406_v32 }
 0x168   : > { %1732 = vmatprep.mubr.msk.f32.mxu0 %vm1916_vm1, %v1917_v10 }
 0x23a   : > { %v585_v33 = vpop.f32.mrb[2].mxu0 }
 0x23b   : > { %v589_v34 = vmul.f32 0.35355338, %v585_v33  ;;  %v1713_v35 = vpop.f32.mrb[3].mxu0 }
 0x23d   : > { %v591_v36 = vsel %vm590_vm4, %v589_v34, -inf }
 0x23e   : > { %592 = vmax.xlane.f32.xlu1 %v591_v36 }
 0x24f   : > { %1859 = vrot.lane.b32.xlu1 %v2029_v31, %s1918_s26 }
 0x253   : > { %682 = vrot.lane.b32.xlu1 %v406_v32, %s1918_s26 }
 0x2cb   : > { %v593_v37 = vpop.xlane.xlu1 %592 }
 0x2cc   : > { %v594_v38 = vsub.f32 %v589_v34, %v593_v37 }
 0x2ce   : > { %v595_v39 = vmul.f32 1.442695, %v594_v38 }
 0x2cf   : > { %v1860_v47 = vpop.permute.xlu1 %1859 }
 0x2d0   : > { %1888 = vpow2.f32 %v595_v39  ;;  %v1862_v49 = vunpack.i.h.bf16 %v1860_v47  ;;  %v1861_v50 = vunpack.i.l.bf16 %v1860_v47 }
 0x2d2   : > { %v1805_v52 = vpack.c.bf16 %v1862_v49, %v1861_v50 }
 0x2d3   : > { %v683_v53 = vpop.permute.xlu1 %682 }
 0x2da   : > { %v1889_v40 = vpop.eup %1888 }
 0x2db   : > { %v597_v41 = vsel %vm590_vm4, %v1889_v40, 0.0 }
 0x2dc   : > { %598 = vadd.xlane.f32.xlu0 %v597_v41 }
 0x2f2   : > { %1854 = vrot.lane.b32.xlu0 %v2029_v31, %s1914_s17 }
 0x369   : > { %v599_v42 = vpop.xlane.xlu0 %598 }
 0x36a   : > { %1890 = vrcp.f32 %v599_v42 }
 0x36d   : > { %v1855_v43 = vpop.permute.xlu0 %1854 }
 0x36e   : > { %v1857_v44 = vunpack.i.h.bf16 %v1855_v43  ;;  %v1856_v45 = vunpack.i.l.bf16 %v1855_v43 }
 0x370   : > { %v1802_v46 = vpack.c.bf16 %v1857_v44, %v1856_v45 }
 0x372   : > { %1803 = vmatpush3.bf16.msra.mxu1 %v1802_v46 }
 0x373   : > { %1804 = vmatprep.subr.bf16.mxu1 %v1915_v8 }
 0x374   : > { %v1891_v48 = vpop.eup %1890 }
 0x375   : > { %v601_v51 = vmul.f32 %v1891_v48, %v1889_v40 }
 0x377   : > { %1719 = vmatmul.mubr.msk.f32.vlgmr.msra.gmra.mrb[2].mxu1 %vm590_vm4, %v601_v51 }
 0x378   : > { %1725 = vmatprep.mubr.msk.f32.mxu1 %vm1916_vm1, %v1917_v10 }
 0x37b   : > { %1807 = vmatpush3.bf16.xpose.msk.msra.mxu1 %vm2025_vm3, %v1805_v52 }
 0x37c   : > { %1740 = vmatprep.subr.mxu1 %v1917_v10 }
 0x382   : > { %1726 = vmatmul.mubr.msk.f32.vlgmr.msra.gmra.mrb[4].mxu1 %vm509_vm2, %v683_v53 }
 0x383   : > { %1742 = vmatprep.mubr.msk.f32.mxu1 %vm1916_vm1, %v1917_v10  ;;  %1741 = vmatpush3.msra.mxu1 %v681_v54 }
 0x384   : > { %1815 = vmatprep.subr.bf16.mxu1 %v1915_v8 }
 0x44a   : > { %v677_v55 = vpop.f32.mrb[2].mxu1 }
 0x44b   : > { %v1720_v56 = vpop.f32.mrb[3].mxu1  ;;  %1743 = vmatmul.mubr.msk.f32.vlgmr.msra.gmra.mrb[6].mxu1 %vm509_vm2, %v677_v55 }
 0x44c   : > { %1756 = vmatprep.mubr.msk.f32.mxu1 %vm1916_vm1, %v1917_v10  ;;  %v1175_v56 = vld [vmem:[%s2137_s4 + $0x10] sm:$0xff] }
 0x455   : > { %v760_v57 = vpop.f32.mrb[4].mxu1 }
 0x456   : > { %v764_v58 = vmul.f32 0.35355338, %v760_v57  ;;  %v1727_v59 = vpop.f32.mrb[5].mxu1 }
 0x458   : > { %v765_v60 = vsel %vm590_vm4, %v764_v58, -inf }
 0x459   : > { %766 = vmax.xlane.f32.xlu0 %v765_v60 }
 0x46f   : > { %1864 = vrot.lane.b32.xlu0 %v2029_v31, %s1919_s9  ;;  %s320_s9 = scalar_lea.vmem %s2141_s8, %s1608_s19 }
 0x473   : > { %1002 = vrot.lane.b32.xlu0 %v406_v32, %s1920_s10 }
 0x477   : > { %1250 = vrot.lane.b32.xlu0 %v406_v32, %s1921_s11 }
 0x4e6   : > { %v767_v61 = vpop.xlane.xlu0 %766 }
 0x4e7   : > { %v768_v62 = vsub.f32 %v764_v58, %v767_v61 }
 0x4e9   : > { %v769_v63 = vmul.f32 1.442695, %v768_v62 }
 0x4ea   : > { %v1865_v0 = vpop.permute.xlu0 %1864 }
 0x4eb   : > { %1892 = vpow2.f32 %v769_v63  ;;  %v1867_v1 = vunpack.i.h.bf16 %v1865_v0  ;;  %v1866_v2 = vunpack.i.l.bf16 %v1865_v0 }
 0x4ed   : > { %v1809_v3 = vpack.c.bf16 %v1867_v1, %v1866_v2 }
 0x4ee   : > { %v1003_v24 = vpop.permute.xlu0 %1002 }
 0x4ef   : > { %1810 = vmatpush3.bf16.msra.mxu0 %v1809_v3 }
 0x4f0   : > { %1735 = vmatprep.subr.mxu0 %v1917_v10 }
 0x4f2   : > { %v1251_v26 = vpop.permute.xlu0 %1250 }
 0x4f5   : > { %v1893_v4 = vpop.eup %1892 }
 0x4f6   : > { %v771_v5 = vsel %vm590_vm4, %v1893_v4, 0.0 }
 0x4f7   : > { %772 = vadd.xlane.f32.xlu1 %v771_v5 }
 0x508   : > { %1869 = vrot.lane.b32.xlu1 %v2029_v31, %s1920_s10 }
 0x50c   : > { %1874 = vrot.lane.b32.xlu1 %v2029_v31, %s1921_s11 }
 0x51e   : > { %v998_v6 = vpop.f32.mrb[6].mxu1 }
 0x51f   : > { %v1744_v7 = vpop.f32.mrb[7].mxu1 }
 0x520   : > { %v1636_v7 = vld [vmem:[%s2138_s5] ss:$0 sm:$0xff] }
 0x584   : > { %v773_v9 = vpop.xlane.xlu1 %772 }
 0x585   : > { %1894 = vrcp.f32 %v773_v9 }
 0x588   : > { %v1870_v15 = vpop.permute.xlu1 %1869 }
 0x589   : > { %v1872_v16 = vunpack.i.h.bf16 %v1870_v15  ;;  %v1871_v17 = vunpack.i.l.bf16 %v1870_v15 }
 0x58b   : > { %v1812_v18 = vpack.c.bf16 %v1872_v16, %v1871_v17 }
 0x58c   : > { %v1875_v20 = vpop.permute.xlu1 %1874 }
 0x58d   : > { %v1877_v22 = vunpack.i.h.bf16 %v1875_v20  ;;  %v1876_v23 = vunpack.i.l.bf16 %v1875_v20 }
 0x58f   : > { %v1895_v11 = vpop.eup %1894  ;;  %v1819_v25 = vpack.c.bf16 %v1877_v22, %v1876_v23 }
 0x590   : > { %v775_v13 = vmul.f32 %v1895_v11, %v1893_v4 }
 0x592   : > { %1733 = vmatmul.mubr.msk.f32.vlgmr.msra.gmra.mrb[4].mxu0 %vm590_vm4, %v775_v13 }
 0x593   : > { %1736 = vmatpush3.msra.mxu0 %v855_v14  ;;  %1737 = vmatprep.mubr.msk.f32.mxu0 %vm1916_vm1, %v1917_v10 }
 0x594   : > { %1811 = vmatprep.subr.bf16.mxu0 %v1915_v8 }
 0x665   : > { %v851_v19 = vpop.f32.mrb[4].mxu0 }
 0x666   : > { %v1734_v21 = vpop.f32.mrb[5].mxu0  ;;  %1738 = vmatmul.mubr.msk.f32.vlgmr.msra.gmra.mrb[6].mxu0 %vm509_vm2, %v851_v19 }
 0x667   : > { %1814 = vmatpush3.bf16.xpose.msk.msra.mxu0 %vm2025_vm3, %v1812_v18  ;;  %1749 = vmatprep.mubr.msk.f32.mxu0 %vm1916_vm1, %v1917_v10 }
 0x668   : > { %1818 = vmatprep.subr.bf16.mxu0 %v1915_v8 }
 0x66e   : > { %1750 = vmatmul.mubr.msk.f32.vlgmr.msra.gmra.mrb[8].mxu0 %vm509_vm2, %v1003_v24 }
 0x66f   : > { %1821 = vmatpush3.bf16.xpose.msk.msra.mxu0 %vm2025_vm3, %v1819_v25  ;;  %1768 = vmatprep.mubr.msk.f32.mxu0 %vm1916_vm1, %v1917_v10  ;;  %v1638_v25 = vld [vmem:[%s2140_s7] ss:$0 sm:$0xff] }
 0x676   : > { %1769 = vmatmul.mubr.msk.f32.vlgmr.msra.gmra.mrb[10].mxu0 %vm509_vm2, %v1251_v26 }
 0x739   : > { %v925_v27 = vpop.f32.mrb[6].mxu0 }
 0x73a   : > { %v2084_v28 = vadd.f32 %v998_v6, %v925_v27  ;;  %v1739_v30 = vpop.f32.mrb[7].mxu0 }
 0x741   : > { %v1080_v32 = vpop.f32.mrb[8].mxu0 }
 0x742   : > { %v1084_v33 = vmul.f32 0.35355338, %v1080_v32  ;;  %v1751_v34 = vpop.f32.mrb[9].mxu0 }
 0x744   : > { %v1085_v35 = vsel %vm590_vm4, %v1084_v33, -inf }
 0x745   : > { %1086 = vmax.xlane.f32.xlu1 %v1085_v35 }
 0x749   : > { %v1328_v36 = vpop.f32.mrb[10].mxu0 }
 0x74a   : > { %v1332_v37 = vmul.f32 0.35355338, %v1328_v36  ;;  %v1770_v29 = vpop.f32.mrb[11].mxu0 }
 0x74c   : > { %v1333_v38 = vsel %vm590_vm4, %v1332_v37, -inf }
 0x74d   : > { %1334 = vmax.xlane.f32.xlu1 %v1333_v38 }
 0x7d2   : > { %v1087_v39 = vpop.xlane.xlu1 %1086 }
 0x7d3   : > { %v1088_v40 = vsub.f32 %v1084_v33, %v1087_v39 }
 0x7d5   : > { %v1089_v41 = vmul.f32 1.442695, %v1088_v40 }
 0x7d7   : > { %1896 = vpow2.f32 %v1089_v41 }
 0x7da   : > { %v1335_v42 = vpop.xlane.xlu1 %1334 }
 0x7db   : > { %v1336_v43 = vsub.f32 %v1332_v37, %v1335_v42 }
 0x7dd   : > { %v1337_v44 = vmul.f32 1.442695, %v1336_v43 }
 0x7df   : > { %1898 = vpow2.f32 %v1337_v44 }
 0x7e1   : > { %v1897_v45 = vpop.eup %1896 }
 0x7e2   : > { %v1091_v46 = vsel %vm590_vm4, %v1897_v45, 0.0 }
 0x7e3   : > { %1092 = vadd.xlane.f32.xlu0 %v1091_v46 }
 0x7e9   : > { %v1899_v47 = vpop.eup %1898 }
 0x7ea   : > { %v1339_v48 = vsel %vm590_vm4, %v1899_v47, 0.0 }
 0x7eb   : > { %1340 = vadd.xlane.f32.xlu1 %v1339_v48 }
 0x7f9   : > { %1879 = vrot.lane.b32.xlu0 %v2029_v31, %s1922_s14 }
 0x7fc   : > { %1884 = vrot.lane.b32.xlu1 %v2029_v31, %s1923_s15 }
 0x870   : > { %v1093_v49 = vpop.xlane.xlu0 %1092 }
 0x871   : > { %1900 = vrcp.f32 %v1093_v49 }
 0x874   : > { %v1880_v50 = vpop.permute.xlu0 %1879 }
 0x875   : > { %v1882_v51 = vunpack.i.h.bf16 %v1880_v50  ;;  %v1881_v52 = vunpack.i.l.bf16 %v1880_v50 }
 0x877   : > { %v1816_v53 = vpack.c.bf16 %v1882_v51, %v1881_v52 }
 0x878   : > { %v1341_v31 = vpop.xlane.xlu1 %1340 }
 0x879   : > { %1817 = vmatpush3.bf16.msra.mxu1 %v1816_v53  ;;  %1902 = vrcp.f32 %v1341_v31 }
 0x87a   : > { %1759 = vmatprep.subr.mxu1 %v1917_v10 }
 0x87b   : > { %v1901_v54 = vpop.eup %1900 }
 0x87c   : > { %v1095_v55 = vmul.f32 %v1901_v54, %v1897_v45  ;;  %v1885_v57 = vpop.permute.xlu1 %1884 }
 0x87d   : > { %v1887_v58 = vunpack.i.h.bf16 %v1885_v57  ;;  %v1886_v59 = vunpack.i.l.bf16 %v1885_v57 }
 0x87e   : > { %1757 = vmatmul.mubr.msk.f32.vlgmr.msra.gmra.mrb[8].mxu1 %vm590_vm4, %v1095_v55 }
 0x87f   : > { %1760 = vmatpush3.msra.mxu1 %v1175_v56  ;;  %1761 = vmatprep.mubr.msk.f32.mxu1 %vm1916_vm1, %v1917_v10  ;;  %v1823_v61 = vpack.c.bf16 %v1887_v58, %v1886_v59 }
 0x880   : > { %1822 = vmatprep.subr.bf16.mxu1 %v1915_v8  ;;  %v1423_v8 = vld [vmem:[%s2137_s4 + $0x18] sm:$0xff] }
 0x883   : > { %v1903_v60 = vpop.eup %1902 }
 0x884   : > { %v1343_v0 = vmul.f32 %v1903_v60, %v1899_v47 }
 0x951   : > { %v1171_v62 = vpop.f32.mrb[8].mxu1 }
 0x952   : > { %v1758_v63 = vpop.f32.mrb[9].mxu1  ;;  %1762 = vmatmul.mubr.msk.f32.vlgmr.msra.gmra.mrb[10].mxu1 %vm509_vm2, %v1171_v62 }
 0x953   : > { %1824 = vmatpush3.bf16.msra.mxu1 %v1823_v61  ;;  %1775 = vmatprep.mubr.msk.f32.mxu1 %vm1916_vm1, %v1917_v10 }
 0x954   : > { %1778 = vmatprep.subr.mxu1 %v1917_v10 }
 0x956   : > { %1776 = vmatmul.mubr.msk.f32.vlgmr.msra.gmra.mrb[12].mxu1 %vm590_vm4, %v1343_v0 }
 0x957   : > { %1780 = vmatprep.mubr.msk.f32.mxu1 %vm1916_vm1, %v1917_v10  ;;  %1779 = vmatpush3.msra.mxu1 %v1423_v8 }
 0xa25   : > { %v1245_v1 = vpop.f32.mrb[10].mxu1 }
 0xa26   : > { %v1249_v2 = vadd.f32 %v1245_v1, %v2084_v28  ;;  %v1763_v3 = vpop.f32.mrb[11].mxu1 }
 0xa29   : > { %v1419_v4 = vpop.f32.mrb[12].mxu1 }
 0xa2a   : > { %v1777_v5 = vpop.f32.mrb[13].mxu1  ;;  %1781 = vmatmul.mubr.msk.f32.vlgmr.msra.gmra.mrb[14].mxu1 %vm509_vm2, %v1419_v4 }
 0xafd   : > { %v1493_v6 = vpop.f32.mrb[14].mxu1 }
 0xafe   : > { %v1497_v9 = vadd.f32 %v1493_v6, %v1249_v2  ;;  %v1782_v10 = vpop.f32.mrb[15].mxu1 }
 0xb00   : > { %v1505_v11 = vadd.f32 %v1636_v7, %v1497_v9 }
 0xb02   : > { %v1506_v13 = vadd.f32 %v1505_v11, %v2012_v12  ;;  %v1637_v12 = vld [vmem:[%s2139_s6] ss:$0 sm:$0xff] }
 0xb04   : > { %v1507_v14 = vsel %vm335_vm0, %v1506_v13, 0.0 }
 0xb05   : > { %1508 = vadd.xlane.f32.xlu0 %v1507_v14 }
 0xb92   : > { %v1509_v15 = vpop.xlane.xlu0 %1508 }
 0xb93   : > { %v1511_v16 = vmul.f32 0.03125, %v1509_v15 }
 0xb95   : > { %v1512_v17 = vsub.f32 %v1506_v13, %v1511_v16 }
 0xb97   : > { %v1513_v18 = vmul.f32 %v1512_v17, %v1512_v17 }
 0xb99   : > { %v1514_v19 = vsel %vm335_vm0, %v1513_v18, 0.0 }
 0xb9a   : > { %1515 = vadd.xlane.f32.xlu1 %v1514_v19 }
 0xc27   : > { %v1516_v20 = vpop.xlane.xlu1 %1515 }
 0xc28   : > { %v1517_v21 = vmul.f32 0.03125, %v1516_v20 }
 0xc2a   : > { %v1518_v22 = vadd.f32 1e-05, %v1517_v21 }
 0xc2c   : > { %1904 = vrsqrt.f32 %v1518_v22 }
 0xc36   : > { %v1905_v23 = vpop.eup %1904 }
 0xc37   : > { %v1520_v24 = vmul.f32 %v1905_v23, %v1512_v17 }
 0xc39   : > { %v1528_v26 = vmul.f32 %v1637_v12, %v1520_v24 }
 0xc3b   : > { %v1536_v27 = vadd.f32 %v1638_v25, %v1528_v26 }
 0xc3d   : > { %1537 = vst.msk [vmem:[%s320_s9] sm:$0xff] %vm335_vm0, %v1536_v27 }
 0xc3e PF: > { %s18_s27 = sadd.s32 1, %s1912_s27  }
 0xc3f   : > { %p15_p4 = scmp.ge.s32.totalorder %s18_s27, 4  }
 0xc41   :  { %17 = sbr.rel (!%p15_p4) target bundleno = 1 (0x1), region = 85 }

// kernel: graformer_decoder.7
= control target key start
LH: loop header
LB: loop body
LE: loop exit
PB: predicated region body
PF: predicated region fallthrough
CT: control target
= control target key end

     0   :  { %s1662_s24 = smov 0   ;;  %s1827_s0 = inlined_call_operand.vmem [shape: f32[2,8,32], index: 0, kind: input, shape index: {}]   ;;  %s1828_s1 = inlined_call_operand.vmem [shape: f32[32,96], index: 1, kind: input, shape index: {}]   ;;  %s1829_s2 = inlined_call_operand.vmem [shape: f32[1,96], index: 2, kind: input, shape index: {}]   ;;  %s1830_s3 = inlined_call_operand.vmem [shape: f32[32,32], index: 3, kind: input, shape index: {}]   ;;  %s1831_s4 = inlined_call_operand.vmem [shape: f32[1,32], index: 4, kind: input, shape index: {}]   ;;  %s1832_s5 = inlined_call_operand.vmem [shape: f32[1,32], index: 5, kind: input, shape index: {}]   ;;  %s1833_s6 = inlined_call_operand.vmem [shape: f32[1,32], index: 6, kind: input, shape index: {}]   ;;  %s1834_s7 = inlined_call_operand.vmem [shape: f32[2,8,32], index: 7, kind: output, shape index: {}]  }
   0x1 LB: > { %s1424_s25 = sadd.s32 4294967295, %s1606_s24   ;;  %p1428_p0 = scmp.ge.s32.totalorder %s1606_s24, 1  ;;  %s1606_s24 = sphi %s1662_s24, %s17_s24  }
   0x2   : > { %p236_p1 = scmp.lt.s32.totalorder %s1606_s24, 3 }
   0x4   : > { %p237_p2 = pnand %p1428_p0, %p236_p1 }
   0x5   : > { %v275_v0 = vld [vmem:[%s1828_s1] sm:$0xff] (!%p237_p2)  ;;  %v276_v1 = vld [vmem:[%s1828_s1 + $0x8] sm:$0xff] (!%p237_p2)  ;;  %v277_v2 = vld [vmem:[%s1828_s1 + $0x10] sm:$0xff] (!%p237_p2)  ;;  %v1608_v3 = vmov (!%p237_p2), 0.0|0.0   ;;  %vm1609_vm0 = vmmov (!%p237_p2), 0   ;;  %v1610_v6 = vmov (!%p237_p2), 0.0   ;;  %v360_v16 = vlaneseq (!%p237_p2) }
   0x6   : > { %240 = sbr.rel (%p237_p2) target bundleno = 2904 (0xb58), region = 48  ;;  %1554 = vmatprep.subr.bf16.mxu0 (!%p237_p2), %v1608_v3  ;;  %v1555_v4 = vpack.c.bf16 (!%p237_p2), %v276_v1, %v275_v0  ;;  %v278_v5 = vld [vmem:[%s1828_s1 + $0x18] sm:$0xff] (!%p237_p2)  ;;  %1491 = vmatprep.mubr.msk.f32.mxu0 (!%p237_p2), %vm1609_vm0, %v1610_v6  ;;  %p266_p3 = scmp.lt.s32.totalorder (!%p237_p2), %s1424_s25, 1  ;;  %vm286_vm1 = vcmask (!%p237_p2), 261120   ;;  %v1431_v9 = vld [vmem:[%s1829_s2] ss:$0 sm:$0xff] (!%p237_p2) }
   0x7   : > { %1494 = vmatprep.subr.mxu1 (!%p237_p2), %v1610_v6  ;;  %1496 = vmatprep.mubr.msk.f32.mxu1 (!%p237_p2), %vm1609_vm0, %v1610_v6  ;;  %v1558_v7 = vpack.c.bf16 (!%p237_p2), %v278_v5, %v277_v2  ;;  %s1611_s17 = smov (!%p237_p2), 120   ;;  %s1612_s18 = smov (!%p237_p2), 96   ;;  %vm368_vm2 = vcmask (!%p237_p2), 64512   ;;  %v1721_v17 = vshrl.u32 (!%p237_p2), %v360_v16, 7  ;;  %v1723_v18 = vand.u32 (!%p237_p2), 127, %v360_v16  ;;  %v700_v39 = vld [vmem:[%s1830_s3 + $0x8] sm:$0xff] (!%p237_p2) }
   0x8   : > { %1556 = vmatpush3.bf16.msra.mxu0 (!%p237_p2), %v1555_v4  ;;  %s1613_s19 = smov (!%p237_p2), 88   ;;  %s1614_s20 = smov (!%p237_p2), 56   ;;  %v532_v48 = vld [vmem:[%s1830_s3] sm:$0xff] (!%p237_p2) }
   0x9   : > { %1557 = vmatprep.subr.bf16.mxu0 (!%p237_p2), %v1608_v3  ;;  %vm364_vm3 = vcmp.ge.s32.totalorder (!%p237_p2), %v1721_v17, %v1723_v18  ;;  %s1615_s21 = smov (!%p237_p2), 64   ;;  %s1616_s22 = smov (!%p237_p2), 80   ;;  %v1256_v17 = vld [vmem:[%s1830_s3 + $0x18] sm:$0xff] (!%p237_p2) }
   0xa   : > { %s1617_s23 = smov (!%p237_p2), 112   ;;  %s1618_s30 = smov (!%p237_p2), 72  }
   0xb   : > { %s1619_s8 = smov (!%p237_p2), 104   ;;  %s1620_s9 = smov (!%p237_p2), 48  }
   0xc   : > { %1559 = vmatpush3.bf16.msra.mxu0 (!%p237_p2), %v1558_v7  ;;  %s1621_s13 = smov (!%p237_p2), 40  }
   0xd   : > { %s1836_s25 = smov (!%p266_p3, %s1424_s25), 1  ;;  %1504 = vmatprep.subr.mxu0 %v1610_v6 }
   0xe   : > { %s1429_s11 = sshll.u32 %s1836_s25, 3 }
   0xf   : > { %s269_s14 = scalar_lea.vmem %s1827_s0, %s1429_s11  ;;  %s273_s26 = scalar_lea.vmem %s1834_s7, %s1429_s11 }
  0x10   : > { %v1695_v8 = vld [vmem:[%s269_s14] sm:$0xff] }
  0x11   : > { %1492 = vmatmul.mubr.msk.f32.vlgmr.msra.gmra.mrb[0].mxu0 %vm286_vm1, %v1695_v8 }
  0x12   : > { %1506 = vmatprep.mubr.msk.f32.mxu0 %vm1609_vm0, %v1610_v6 }
  0xe4   : > { %v356_v10 = vpop.f32.mrb[0].mxu0 }
  0xe5   : > { %v1705_v11 = vadd.f32 %v1431_v9, %v356_v10  ;;  %v1493_v12 = vpop.f32.mrb[1].mxu0 }
  0xe7   : > { %533 = vrot.lane.b32.xlu1 %v1705_v11, %s1611_s17  ;;  %366 = vrot.lane.b32.xlu0 %v1705_v11, %s1612_s18 }
  0xeb   : > { %535 = vrot.lane.b32.xlu0 %v1705_v11, %s1613_s19 }
 0x159   : > { %v367_v13 = vpop.permute.xlu0 %366  ;;  %v534_v15 = vpop.permute.xlu1 %533 }
 0x15a   : > { %1495 = vmatpush3.xpose.msk.msra.mxu1 %vm368_vm2, %v367_v13 }
 0x15b   : > { %1499 = vmatprep.subr.mxu1 %v1610_v6 }
 0x15d   : > { %1497 = vmatmul.mubr.msk.f32.vlgmr.msra.gmra.mrb[0].mxu1 %vm368_vm2, %v1705_v11  ;;  %v536_v14 = vpop.permute.xlu0 %535 }
 0x15e   : > { %1505 = vmatpush3.xpose.msk.msra.mxu0 %vm368_vm2, %v536_v14  ;;  %1501 = vmatprep.mubr.msk.f32.mxu1 %vm1609_vm0, %v1610_v6 }
 0x15f   : > { %1514 = vmatprep.subr.mxu0 %v1610_v6 }
 0x161   : > { %1507 = vmatmul.mubr.msk.f32.vlgmr.msra.gmra.mrb[2].mxu0 %vm368_vm2, %v534_v15  ;;  %v1014_v15 = vld [vmem:[%s1830_s3 + $0x10] sm:$0xff] }
 0x162   : > { %1516 = vmatprep.mubr.msk.f32.mxu0 %vm1609_vm0, %v1610_v6  ;;  %1515 = vmatpush3.msra.mxu0 %v700_v39 }
 0x163   : > { %1524 = vmatprep.subr.mxu0 %v1610_v6 }
 0x230   : > { %v439_v19 = vpop.f32.mrb[0].mxu1 }
 0x231   : > { %v443_v20 = vmul.f32 0.35355338, %v439_v19  ;;  %v1498_v21 = vpop.f32.mrb[1].mxu1 }
 0x233   : > { %v444_v22 = vsel %vm364_vm3, %v443_v20, -1e+30 }
 0x234   : > { %v607_v23 = vpop.f32.mrb[2].mxu0  ;;  %v445_v24 = vsel %vm368_vm2, %v444_v22, -inf }
 0x235   : > { %v611_v25 = vmul.f32 0.35355338, %v607_v23  ;;  %446 = vmax.xlane.f32.xlu1 %v445_v24  ;;  %v1508_v26 = vpop.f32.mrb[3].mxu0 }
 0x237   : > { %v612_v27 = vsel %vm364_vm3, %v611_v25, -1e+30 }
 0x238   : > { %v613_v28 = vsel %vm368_vm2, %v612_v27, -inf }
 0x239   : > { %614 = vmax.xlane.f32.xlu0 %v613_v28 }
 0x2c2   : > { %v447_v29 = vpop.xlane.xlu1 %446 }
 0x2c3   : > { %v448_v30 = vsub.f32 %v444_v22, %v447_v29 }
 0x2c5   : > { %v449_v31 = vmul.f32 1.442695, %v448_v30 }
 0x2c6   : > { %v615_v32 = vpop.xlane.xlu0 %614 }
 0x2c7   : > { %1582 = vpow2.f32 %v449_v31  ;;  %v616_v33 = vsub.f32 %v612_v27, %v615_v32 }
 0x2c9   : > { %v617_v34 = vmul.f32 1.442695, %v616_v33 }
 0x2cb   : > { %1584 = vpow2.f32 %v617_v34 }
 0x2d1   : > { %v1583_v35 = vpop.eup %1582 }
 0x2d2   : > { %v451_v36 = vsel %vm368_vm2, %v1583_v35, 0.0 }
 0x2d3   : > { %452 = vadd.xlane.f32.xlu0 %v451_v36 }
 0x2d5   : > { %v1585_v37 = vpop.eup %1584 }
 0x2d6   : > { %v619_v38 = vsel %vm368_vm2, %v1585_v37, 0.0 }
 0x2d7   : > { %620 = vadd.xlane.f32.xlu1 %v619_v38 }
 0x2e8   : > { %624 = vrot.lane.b32.xlu1 %v1705_v11, %s1614_s20 }
 0x2e9   : > { %456 = vrot.lane.b32.xlu0 %v1705_v11, %s1615_s21 }
 0x2ec   : > { %849 = vrot.lane.b32.xlu1 %v1705_v11, %s1616_s22 }
 0x2ed   : > { %847 = vrot.lane.b32.xlu0 %v1705_v11, %s1617_s23 }
 0x360   : > { %v453_v40 = vpop.xlane.xlu0 %452 }
 0x361   : > { %1586 = vrcp.f32 %v453_v40 }
 0x364   : > { %v621_v41 = vpop.xlane.xlu1 %620  ;;  %v457_v42 = vpop.permute.xlu0 %456 }
 0x365   : > { %1588 = vrcp.f32 %v621_v41  ;;  %1500 = vmatpush3.msra.mxu1 %v457_v42 }
 0x366   : > { %1509 = vmatprep.subr.mxu1 %v1610_v6 }
 0x368   : > { %v625_v45 = vpop.permute.xlu1 %624  ;;  %v848_v54 = vpop.permute.xlu0 %847 }
 0x36b   : > { %v1587_v43 = vpop.eup %1586 }
 0x36c   : > { %v455_v44 = vmul.f32 %v1587_v43, %v1583_v35  ;;  %v850_v52 = vpop.permute.xlu1 %849 }
 0x36e   : > { %1502 = vmatmul.mubr.msk.f32.vlgmr.msra.gmra.mrb[2].mxu1 %vm368_vm2, %v455_v44 }
 0x36f   : > { %v1589_v46 = vpop.eup %1588  ;;  %1510 = vmatpush3.msra.mxu1 %v625_v45  ;;  %1511 = vmatprep.mubr.msk.f32.mxu1 %vm1609_vm0, %v1610_v6 }
 0x370   : > { %v623_v47 = vmul.f32 %v1589_v46, %v1585_v37  ;;  %1519 = vmatprep.subr.mxu1 %v1610_v6  ;;  %v1449_v37 = vld [vmem:[%s1831_s4] ss:$0 sm:$0xff] }
 0x372   : > { %1512 = vmatmul.mubr.msk.f32.vlgmr.msra.gmra.mrb[4].mxu1 %vm368_vm2, %v623_v47 }
 0x373   : > { %1521 = vmatprep.mubr.msk.f32.mxu1 %vm1609_vm0, %v1610_v6  ;;  %1520 = vmatpush3.msra.mxu1 %v532_v48 }
 0x374   : > { %1529 = vmatprep.subr.mxu1 %v1610_v6 }
 0x441   : > { %v528_v49 = vpop.f32.mrb[2].mxu1 }
 0x442   : > { %v1503_v50 = vpop.f32.mrb[3].mxu1  ;;  %1522 = vmatmul.mubr.msk.f32.vlgmr.msra.gmra.mrb[6].mxu1 %vm368_vm2, %v528_v49 }
 0x443   : > { %1531 = vmatprep.mubr.msk.f32.mxu1 %vm1609_vm0, %v1610_v6 }
 0x445   : > { %v696_v51 = vpop.f32.mrb[4].mxu1 }
 0x446   : > { %v1513_v53 = vpop.f32.mrb[5].mxu1  ;;  %1517 = vmatmul.mubr.msk.f32.vlgmr.msra.gmra.mrb[4].mxu0 %vm368_vm2, %v696_v51 }
 0x447   : > { %1525 = vmatpush3.xpose.msk.msra.mxu0 %vm368_vm2, %v850_v52  ;;  %1526 = vmatprep.mubr.msk.f32.mxu0 %vm1609_vm0, %v1610_v6  ;;  %v1451_v53 = vld [vmem:[%s1833_s6] ss:$0 sm:$0xff] }
 0x448   : > { %1534 = vmatprep.subr.mxu0 %v1610_v6 }
 0x44a   : > { %1527 = vmatmul.mubr.msk.f32.vlgmr.msra.gmra.mrb[6].mxu0 %vm368_vm2, %v848_v54 }
 0x44b   : > { %1536 = vmatprep.mubr.msk.f32.mxu0 %vm1609_vm0, %v1610_v6  ;;  %1535 = vmatpush3.msra.mxu0 %v1014_v15 }
 0x44c   : > { %1544 = vmatprep.subr.mxu0 %v1610_v6 }
 0x515   : > { %v843_v55 = vpop.f32.mrb[6].mxu1 }
 0x516   : > { %v1523_v56 = vpop.f32.mrb[7].mxu1 }
 0x519   : > { %v770_v57 = vpop.f32.mrb[4].mxu0 }
 0x51a   : > { %v1768_v58 = vadd.f32 %v843_v55, %v770_v57  ;;  %v1518_v59 = vpop.f32.mrb[5].mxu0 }
 0x51d   : > { %v921_v60 = vpop.f32.mrb[6].mxu0 }
 0x51e   : > { %v925_v61 = vmul.f32 0.35355338, %v921_v60  ;;  %v1528_v62 = vpop.f32.mrb[7].mxu0 }
 0x520   : > { %v926_v63 = vsel %vm364_vm3, %v925_v61, -1e+30 }
 0x521   : > { %v927_v0 = vsel %vm368_vm2, %v926_v63, -inf }
 0x522   : > { %928 = vmax.xlane.f32.xlu1 %v927_v0 }
 0x533   : > { %1091 = vrot.lane.b32.xlu1 %v1705_v11, %s1618_s30 }
 0x537   : > { %1089 = vrot.lane.b32.xlu1 %v1705_v11, %s1619_s8 }
 0x5af   : > { %v929_v1 = vpop.xlane.xlu1 %928 }
 0x5b0   : > { %v930_v2 = vsub.f32 %v926_v63, %v929_v1 }
 0x5b2   : > { %v931_v3 = vmul.f32 1.442695, %v930_v2 }
 0x5b3   : > { %v1092_v12 = vpop.permute.xlu1 %1091 }
 0x5b4   : > { %1590 = vpow2.f32 %v931_v3 }
 0x5b7   : > { %v1090_v14 = vpop.permute.xlu1 %1089 }
 0x5be   : > { %v1591_v4 = vpop.eup %1590 }
 0x5bf   : > { %v933_v5 = vsel %vm368_vm2, %v1591_v4, 0.0 }
 0x5c0   : > { %934 = vadd.xlane.f32.xlu0 %v933_v5 }
 0x5d6   : > { %938 = vrot.lane.b32.xlu0 %v1705_v11, %s1620_s9 }
 0x64d   : > { %v935_v7 = vpop.xlane.xlu0 %934 }
 0x64e   : > { %1592 = vrcp.f32 %v935_v7 }
 0x651   : > { %v939_v9 = vpop.permute.xlu0 %938 }
 0x652   : > { %1530 = vmatpush3.msra.mxu1 %v939_v9 }
 0x653   : > { %1539 = vmatprep.subr.mxu1 %v1610_v6 }
 0x658   : > { %v1593_v10 = vpop.eup %1592 }
 0x659   : > { %v937_v13 = vmul.f32 %v1593_v10, %v1591_v4 }
 0x65b   : > { %1532 = vmatmul.mubr.msk.f32.vlgmr.msra.gmra.mrb[8].mxu1 %vm368_vm2, %v937_v13 }
 0x65c   : > { %1540 = vmatpush3.xpose.msk.msra.mxu1 %vm368_vm2, %v1092_v12  ;;  %1541 = vmatprep.mubr.msk.f32.mxu1 %vm1609_vm0, %v1610_v6 }
 0x65d   : > { %1549 = vmatprep.subr.mxu1 %v1610_v6 }
 0x65f   : > { %1542 = vmatmul.mubr.msk.f32.vlgmr.msra.gmra.mrb[10].mxu1 %vm368_vm2, %v1090_v14 }
 0x660   : > { %1551 = vmatprep.mubr.msk.f32.mxu1 %vm1609_vm0, %v1610_v6  ;;  %1550 = vmatpush3.msra.mxu1 %v1256_v17 }
 0x72e   : > { %v1010_v16 = vpop.f32.mrb[8].mxu1 }
 0x72f   : > { %v1533_v19 = vpop.f32.mrb[9].mxu1  ;;  %1537 = vmatmul.mubr.msk.f32.vlgmr.msra.gmra.mrb[8].mxu0 %vm368_vm2, %v1010_v16 }
 0x730   : > { %1546 = vmatprep.mubr.msk.f32.mxu0 %vm1609_vm0, %v1610_v6 }
 0x732   : > { %v1163_v20 = vpop.f32.mrb[10].mxu1 }
 0x733   : > { %v1167_v21 = vmul.f32 0.35355338, %v1163_v20  ;;  %v1543_v22 = vpop.f32.mrb[11].mxu1 }
 0x735   : > { %v1168_v23 = vsel %vm364_vm3, %v1167_v21, -1e+30 }
 0x736   : > { %v1169_v24 = vsel %vm368_vm2, %v1168_v23, -inf }
 0x737   : > { %1170 = vmax.xlane.f32.xlu0 %v1169_v24 }
 0x74d   : > { %1180 = vrot.lane.b32.xlu0 %v1705_v11, %s1621_s13 }
 0x7c4   : > { %v1171_v25 = vpop.xlane.xlu0 %1170 }
 0x7c5   : > { %v1172_v26 = vsub.f32 %v1168_v23, %v1171_v25 }
 0x7c7   : > { %v1173_v27 = vmul.f32 1.442695, %v1172_v26 }
 0x7c8   : > { %v1181_v28 = vpop.permute.xlu0 %1180 }
 0x7c9   : > { %1594 = vpow2.f32 %v1173_v27  ;;  %1545 = vmatpush3.msra.mxu0 %v1181_v28 }
 0x7d3   : > { %v1595_v6 = vpop.eup %1594 }
 0x7d4   : > { %v1175_v29 = vsel %vm368_vm2, %v1595_v6, 0.0 }
 0x7d5   : > { %1176 = vadd.xlane.f32.xlu1 %v1175_v29 }
 0x802   : > { %v1084_v18 = vpop.f32.mrb[8].mxu0 }
 0x803   : > { %v1088_v30 = vadd.f32 %v1084_v18, %v1768_v58  ;;  %v1538_v31 = vpop.f32.mrb[9].mxu0 }
 0x862   : > { %v1177_v11 = vpop.xlane.xlu1 %1176 }
 0x863   : > { %1596 = vrcp.f32 %v1177_v11 }
 0x86d   : > { %v1597_v32 = vpop.eup %1596 }
 0x86e   : > { %v1179_v33 = vmul.f32 %v1597_v32, %v1595_v6 }
 0x870   : > { %1547 = vmatmul.mubr.msk.f32.vlgmr.msra.gmra.mrb[10].mxu0 %vm368_vm2, %v1179_v33 }
 0x943   : > { %v1252_v34 = vpop.f32.mrb[10].mxu0 }
 0x944   : > { %v1548_v35 = vpop.f32.mrb[11].mxu0  ;;  %1552 = vmatmul.mubr.msk.f32.vlgmr.msra.gmra.mrb[12].mxu1 %vm368_vm2, %v1252_v34 }
 0xa17   : > { %v1326_v36 = vpop.f32.mrb[12].mxu1 }
 0xa18   : > { %v1330_v38 = vadd.f32 %v1326_v36, %v1088_v30  ;;  %v1553_v39 = vpop.f32.mrb[13].mxu1 }
 0xa1a   : > { %v1338_v40 = vadd.f32 %v1449_v37, %v1330_v38 }
 0xa1c   : > { %v1339_v41 = vadd.f32 %v1338_v40, %v1695_v8  ;;  %v1450_v8 = vld [vmem:[%s1832_s5] ss:$0 sm:$0xff] }
 0xa1e   : > { %v1340_v42 = vsel %vm286_vm1, %v1339_v41, 0.0 }
 0xa1f   : > { %1341 = vadd.xlane.f32.xlu1 %v1340_v42 }
 0xaac   : > { %v1342_v43 = vpop.xlane.xlu1 %1341 }
 0xaad   : > { %v1344_v44 = vmul.f32 0.03125, %v1342_v43 }
 0xaaf   : > { %v1345_v45 = vsub.f32 %v1339_v41, %v1344_v44 }
 0xab1   : > { %v1346_v46 = vmul.f32 %v1345_v45, %v1345_v45 }
 0xab3   : > { %v1347_v47 = vsel %vm286_vm1, %v1346_v46, 0.0 }
 0xab4   : > { %1348 = vadd.xlane.f32.xlu1 %v1347_v47 }
 0xb41   : > { %v1349_v48 = vpop.xlane.xlu1 %1348 }
 0xb42   : > { %v1350_v49 = vmul.f32 0.03125, %v1349_v48 }
 0xb44   : > { %v1351_v50 = vadd.f32 1e-05, %v1350_v49 }
 0xb46   : > { %1598 = vrsqrt.f32 %v1351_v50 }
 0xb50   : > { %v1599_v51 = vpop.eup %1598 }
 0xb51   : > { %v1353_v52 = vmul.f32 %v1599_v51, %v1345_v45 }
 0xb53   : > { %v1361_v54 = vmul.f32 %v1450_v8, %v1353_v52 }
 0xb55   : > { %v1369_v55 = vadd.f32 %v1451_v53, %v1361_v54 }
 0xb57   : > { %1370 = vst.msk [vmem:[%s273_s26] sm:$0xff] %vm286_vm1, %v1369_v55 }
 0xb58 PF: > { %s17_s24 = sadd.s32 1, %s1606_s24  }
 0xb59   : > { %p14_p4 = scmp.ge.s32.totalorder %s17_s24, 4  }
 0xb5b   :  { %16 = sbr.rel (!%p14_p4) target bundleno = 1 (0x1), region = 78 }

</bundles_post_ra>
